<compile_context>
chip_gen: v7x
topology: tpu7x:2x2x1
jax: 0.10.0
libtpu: 0.0.40
codegen_flags: <defaults>
</compile_context>

<pallas_src>
import jax
import jax.numpy as jnp
from jax import lax
from jax.experimental import pallas as pl
from jax.experimental.pallas import tpu as pltpu


# ----------------------------- Pallas kernels -----------------------------

def conv_pool_kernel(p_ref, w_ref, b_ref, o_ref):
    """Fused 3x3 conv (4 quadrant matmuls) + bias + ReLU + 2x2 max-pool.

    p_ref: (4, TM, 9*Cin)  im2col patches, one slab per pool quadrant
    w_ref: (9*Cin, Cout)   resident flattened conv weight
    b_ref: (1, Cout)       bias
    o_ref: (TM, Cout)      pooled output rows (row = n*Ho*Wo + ho*Wo + wo)
    """
    w = w_ref[...]
    y = jnp.dot(p_ref[0], w, preferred_element_type=jnp.float32)
    for q in range(1, 4):                     # static unroll: 4 MXU matmuls
        y = jnp.maximum(y, jnp.dot(p_ref[q], w, preferred_element_type=jnp.float32))
    # max / relu commute and the bias is quadrant-invariant:
    #   maxpool(relu(conv + b)) == relu(max_q(conv_q) + b)
    o_ref[...] = jnp.maximum(y + b_ref[...], 0.0)


def mlp_kernel(x_ref, w1_ref, b1_ref, w2_ref, b2_ref, o_ref):
    """fc1 + ReLU + fc2, fused.  Tiled over the batch dimension.

    x_ref: (TM, 3136), w1_ref: (3136, 128), b1_ref: (1, 128),
    w2_ref: (128, 128 padded), b2_ref: (1, 128 padded), o_ref: (TM, 128 padded)
    """
    h = jnp.dot(x_ref[...], w1_ref[...], preferred_element_type=jnp.float32)
    h = jnp.maximum(h + b1_ref[...], 0.0)
    o_ref[...] = (
        jnp.dot(h, w2_ref[...], preferred_element_type=jnp.float32) + b2_ref[...]
    )


# ----------------------------- wrappers -----------------------------

def _pool_quadrant_patches(x_nhwc):
    """im2col patches for a fused 3x3 conv (pad=1) + 2x2/2 maxpool.

    Returns (4, N*Ho*Wo, 9*Cin) with
      patches[q, n*Ho*Wo + ho*Wo + wo, (dy*3+dx)*Cin + ci]
        = xpad[n, 2*ho + qy + dy, 2*wo + qx + dx, ci],   q = qy*2 + qx.
    Total bytes equal a standard im2col of the full-resolution conv.
    """
    N, H, W, Cin = x_nhwc.shape
    Ho, Wo = H // 2, W // 2
    xp = jnp.pad(x_nhwc, ((0, 0), (1, 1), (1, 1), (0, 0)))
    quads = []
    for qy in range(2):
        for qx in range(2):
            taps = [
                lax.slice(
                    xp,
                    (0, qy + dy, qx + dx, 0),
                    (N, qy + dy + 2 * (Ho - 1) + 1, qx + dx + 2 * (Wo - 1) + 1, Cin),
                    (1, 2, 2, 1))
                for dy in range(3) for dx in range(3)
            ]
            q = jnp.concatenate(taps, axis=-1)           # (N, Ho, Wo, 9*Cin)
            quads.append(q.reshape(N * Ho * Wo, 9 * Cin))
    return jnp.stack(quads, axis=0)                      # (4, N*Ho*Wo, 9*Cin)


def conv3x3_relu_pool(x_nhwc, wmat, b, *, tm=512):
    """3x3 conv (pad=1, stride=1) + bias + ReLU + 2x2/2 maxpool.

    x_nhwc: (N, H, W, Cin), wmat: (9*Cin, Cout) flattened in (dy, dx, ci) order.
    Returns (N, H//2, W//2, Cout).
    """
    N, H, W, Cin = x_nhwc.shape
    K, Cout = wmat.shape
    assert K == 9 * Cin
    Ho, Wo = H // 2, W // 2
    M = N * Ho * Wo

    patches = _pool_quadrant_patches(x_nhwc)             # (4, M, K)
    b2 = b.reshape(1, Cout)

    tm = min(tm, M)
    grid = (pl.cdiv(M, tm),)
    flops = 2 * 4 * M * K * Cout
    bytes_accessed = 4 * (patches.size + wmat.size + b2.size + M * Cout)

    out = pl.pallas_call(
        conv_pool_kernel,
        out_shape=jax.ShapeDtypeStruct((M, Cout), jnp.float32),
        grid=grid,
        in_specs=[
            pl.BlockSpec((4, tm, K), lambda i: (0, i, 0)),   # patch slab per M tile
            pl.BlockSpec((K, Cout), lambda i: (0, 0)),       # resident weight
            pl.BlockSpec((1, Cout), lambda i: (0, 0)),       # resident bias
        ],
        out_specs=pl.BlockSpec((tm, Cout), lambda i: (i, 0)),
        compiler_params=pltpu.CompilerParams(dimension_semantics=("parallel",)),
        cost_estimate=pl.CostEstimate(flops=flops, transcendentals=0,
                                      bytes_accessed=bytes_accessed),
    )(patches, wmat, b2)
    return out.reshape(N, Ho, Wo, Cout)


def mlp(x, w1, b1, w2p, b2p, *, out_dim=10, tm=256):
    """fc1+ReLU+fc2, tiled over the batch dimension with resident weights.

    w2p/b2p are zero-padded to a lane-dense 128-wide output; the true logits
    are sliced out after the kernel.
    """
    N, D = x.shape
    H = w1.shape[1]
    Op = w2p.shape[1]                                     # padded (lane-dense) width
    tm = min(tm, N)
    grid = (pl.cdiv(N, tm),)
    flops = 2 * N * (D * H + H * Op)
    bytes_accessed = 4 * (x.size + w1.size + w2p.size + H + Op + N * Op)

    out = pl.pallas_call(
        mlp_kernel,
        out_shape=jax.ShapeDtypeStruct((N, Op), jnp.float32),
        grid=grid,
        in_specs=[
            pl.BlockSpec((tm, D), lambda i: (i, 0)),
            pl.BlockSpec((D, H), lambda i: (0, 0)),
            pl.BlockSpec((1, H), lambda i: (0, 0)),
            pl.BlockSpec((H, Op), lambda i: (0, 0)),
            pl.BlockSpec((1, Op), lambda i: (0, 0)),
        ],
        out_specs=pl.BlockSpec((tm, Op), lambda i: (i, 0)),
        compiler_params=pltpu.CompilerParams(dimension_semantics=("parallel",)),
        cost_estimate=pl.CostEstimate(flops=flops, transcendentals=0,
                                      bytes_accessed=bytes_accessed),
    )(x, w1, b1.reshape(1, -1), w2p, b2p.reshape(1, -1))
    return out[:, :out_dim]


def mnist_cnn_forward(x_nchw, kp):
    """Equivalent of MNIST_CNN_Model.forward.  `kp` = prepared (kernel) params."""
    x = jnp.transpose(x_nchw, (0, 2, 3, 1))                        # NCHW -> NHWC (Cin=1: free)
    x = conv3x3_relu_pool(x, kp["conv1_w"], kp["conv1_b"])         # (N,14,14,32)
    x = conv3x3_relu_pool(x, kp["conv2_w"], kp["conv2_b"])         # (N,7,7,64)
    x = x.reshape(x.shape[0], -1)                                  # HWC flatten, matches permuted fc1_w
    return mlp(x, kp["fc1_w"], kp["fc1_b"], kp["fc2_w"], kp["fc2_b"],
               out_dim=kp["n_classes"])                            # (N,10)


# ----------------------------- params (torch layout) + one-time prep -----------------------------

def init_params(key):
    """Parameters in PyTorch conventions (conv OIHW; fc weights as (in,out) with
    torch's CHW flatten order for fc1 rows)."""
    ks = jax.random.split(key, 8)

    def u(k, shape, fan_in):
        bound = 1.0 / jnp.sqrt(fan_in)
        return jax.random.uniform(k, shape, jnp.float32, -bound, bound)

    return {
        "conv1_w": u(ks[0], (32, 1, 3, 3), 9.0),
        "conv1_b": u(ks[1], (32,), 9.0),
        "conv2_w": u(ks[2], (64, 32, 3, 3), 288.0),
        "conv2_b": u(ks[3], (64,), 288.0),
        "fc1_w":   u(ks[4], (64 * 7 * 7, 128), 3136.0),
        "fc1_b":   u(ks[5], (128,), 3136.0),
        "fc2_w":   u(ks[6], (128, 10), 128.0),
        "fc2_b":   u(ks[7], (10,), 128.0),
    }


def prepare_params(p):
    """One-time conversion of torch-convention params to the kernel layout
    (runs once, outside the per-forward hot path)."""
    def conv_w(w_oihw):
        # (Cout, Cin, 3, 3) -> (dy, dx, ci) tap-ordered (9*Cin, Cout)
        return jnp.transpose(w_oihw, (2, 3, 1, 0)).reshape(-1, w_oihw.shape[0])

    # fc1 rows: torch flattens the (N,64,7,7) activation in (c, h, w) order; our
    # pooled activation flattens as (h, w, c).  Permute weight rows CHW -> HWC.
    C, Ho, Wo = 64, 7, 7
    hw = jnp.arange(Ho * Wo)
    c = jnp.arange(C)
    chw_index = (c[None, :] * (Ho * Wo) + hw[:, None]).reshape(-1)   # hwc row -> chw row
    fc1_w_hwc = p["fc1_w"][chw_index, :]

    # fc2: zero-pad 10 -> 128 output columns for a lane-dense final matmul/store.
    n_classes = p["fc2_w"].shape[1]
    pad = 128 - n_classes
    fc2_w_pad = jnp.pad(p["fc2_w"], ((0, 0), (0, pad)))
    fc2_b_pad = jnp.pad(p["fc2_b"], ((0, pad),))

    return {
        "conv1_w": conv_w(p["conv1_w"]), "conv1_b": p["conv1_b"],
        "conv2_w": conv_w(p["conv2_w"]), "conv2_b": p["conv2_b"],
        "fc1_w": fc1_w_hwc, "fc1_b": p["fc1_b"],
        "fc2_w": fc2_w_pad, "fc2_b": fc2_b_pad,
        "n_classes": n_classes,
    }


# ----------------------------- pure-JAX reference -----------------------------

def reference_forward(x_nchw, p):
    """Pure-JAX (XLA) reference using torch-convention params."""
    def conv(x, w, b):
        y = lax.conv_general_dilated(
            x, w, (1, 1), ((1, 1), (1, 1)),
            dimension_numbers=("NCHW", "OIHW", "NCHW"),
            precision=lax.Precision.HIGHEST)
        return jnp.maximum(y + b[None, :, None, None], 0.0)

    def pool(x):
        return lax.reduce_window(x, -jnp.inf, lax.max,
                                 (1, 1, 2, 2), (1, 1, 2, 2), "VALID")

    x = pool(conv(x_nchw, p["conv1_w"], p["conv1_b"]))
    x = pool(conv(x, p["conv2_w"], p["conv2_b"]))
    x = x.reshape(x.shape[0], -1)                      # torch CHW flatten order
    x = jnp.maximum(x @ p["fc1_w"] + p["fc1_b"], 0.0)
    return x @ p["fc2_w"] + p["fc2_b"]


# ----------------------------- main -----------------------------

if __name__ == "__main__":
    key = jax.random.PRNGKey(0)
    kx, kp = jax.random.split(key)
    # MNIST-shaped input (spatial must be 28 so the 64*7*7 flatten holds); batch=2.
    x = jax.random.normal(kx, (2, 1, 28, 28), jnp.float32)
    params = init_params(kp)
    kparams = prepare_params(params)      # one-time layout prep, outside the hot path
    kparams["n_classes"] = int(kparams["n_classes"])   # static for jit

    fwd = jax.jit(mnist_cnn_forward, static_argnames=())
    out = jax.block_until_ready(mnist_cnn_forward(x, kparams))
    ref = jax.block_until_ready(reference_forward(x, params))

    assert out.shape == (2, 10) and out.dtype == jnp.float32
    assert bool(jnp.all(jnp.isfinite(out)))
    assert jnp.allclose(out, ref, rtol=1e-2, atol=1e-2)
    print("KERNEL_OK")
</pallas_src>

<mosaic_0001>
module attributes {stable_mosaic.version = 11 : i64} {
  func.func @conv_pool_kernel(%arg0: i32, %arg1: memref<4x392x9xf32, #tpu.memory_space<vmem>>, %arg2: memref<9x32xf32, #tpu.memory_space<vmem>>, %arg3: memref<1x32xf32, #tpu.memory_space<vmem>>, %arg4: memref<392x32xf32, #tpu.memory_space<vmem>>) attributes {dimension_semantics = [#tpu.dimension_semantics<parallel>], iteration_bounds = array<i64: 1>, scalar_prefetch = 0 : i64, scratch_operands = 0 : i64, tpu.core_type = #tpu.core_type<tc>, window_params = [{transform_indices = @transform_0, window_bounds = array<i64: 4, 392, 9>}, {pipeline_mode = #tpu.pipeline_mode<synchronous>, transform_indices = @transform_1, window_bounds = array<i64: 9, 32>}, {pipeline_mode = #tpu.pipeline_mode<synchronous>, transform_indices = @transform_2, window_bounds = array<i64: 1, 32>}, {transform_indices = @transform_3, window_bounds = array<i64: 392, 32>}]} {
    %c0 = arith.constant 0 : index
    %c0_0 = arith.constant 0 : index
    %0 = vector.load %arg2[%c0, %c0_0] : memref<9x32xf32, #tpu.memory_space<vmem>>, vector<9x32xf32>
    %c0_1 = arith.constant 0 : index
    %c0_2 = arith.constant 0 : index
    %c0_3 = arith.constant 0 : index
    %1 = vector.load %arg1[%c0_1, %c0_2, %c0_3] : memref<4x392x9xf32, #tpu.memory_space<vmem>>, vector<1x392x9xf32>
    %2 = vector.shape_cast %1 : vector<1x392x9xf32> to vector<392x9xf32>
    %cst = arith.constant dense<0.000000e+00> : vector<392x32xf32>
    %3 = tpu.matmul %2, %0, %cst {dimension_numbers = #tpu.dot_dimension_numbers<[1], [0], [0], [1], [0, 0, 1, 1], [], []>} : vector<392x9xf32>, vector<9x32xf32>, vector<392x32xf32> -> vector<392x32xf32>
    %c1 = arith.constant 1 : index
    %c0_4 = arith.constant 0 : index
    %c0_5 = arith.constant 0 : index
    %4 = vector.load %arg1[%c1, %c0_4, %c0_5] : memref<4x392x9xf32, #tpu.memory_space<vmem>>, vector<1x392x9xf32>
    %5 = vector.shape_cast %4 : vector<1x392x9xf32> to vector<392x9xf32>
    %cst_6 = arith.constant dense<0.000000e+00> : vector<392x32xf32>
    %6 = tpu.matmul %5, %0, %cst_6 {dimension_numbers = #tpu.dot_dimension_numbers<[1], [0], [0], [1], [0, 0, 1, 1], [], []>} : vector<392x9xf32>, vector<9x32xf32>, vector<392x32xf32> -> vector<392x32xf32>
    %7 = arith.maximumf %3, %6 : vector<392x32xf32>
    %c2 = arith.constant 2 : index
    %c0_7 = arith.constant 0 : index
    %c0_8 = arith.constant 0 : index
    %8 = vector.load %arg1[%c2, %c0_7, %c0_8] : memref<4x392x9xf32, #tpu.memory_space<vmem>>, vector<1x392x9xf32>
    %9 = vector.shape_cast %8 : vector<1x392x9xf32> to vector<392x9xf32>
    %cst_9 = arith.constant dense<0.000000e+00> : vector<392x32xf32>
    %10 = tpu.matmul %9, %0, %cst_9 {dimension_numbers = #tpu.dot_dimension_numbers<[1], [0], [0], [1], [0, 0, 1, 1], [], []>} : vector<392x9xf32>, vector<9x32xf32>, vector<392x32xf32> -> vector<392x32xf32>
    %11 = arith.maximumf %7, %10 : vector<392x32xf32>
    %c3 = arith.constant 3 : index
    %c0_10 = arith.constant 0 : index
    %c0_11 = arith.constant 0 : index
    %12 = vector.load %arg1[%c3, %c0_10, %c0_11] : memref<4x392x9xf32, #tpu.memory_space<vmem>>, vector<1x392x9xf32>
    %13 = vector.shape_cast %12 : vector<1x392x9xf32> to vector<392x9xf32>
    %cst_12 = arith.constant dense<0.000000e+00> : vector<392x32xf32>
    %14 = tpu.matmul %13, %0, %cst_12 {dimension_numbers = #tpu.dot_dimension_numbers<[1], [0], [0], [1], [0, 0, 1, 1], [], []>} : vector<392x9xf32>, vector<9x32xf32>, vector<392x32xf32> -> vector<392x32xf32>
    %15 = arith.maximumf %11, %14 : vector<392x32xf32>
    %c0_13 = arith.constant 0 : index
    %c0_14 = arith.constant 0 : index
    %16 = vector.load %arg3[%c0_13, %c0_14] : memref<1x32xf32, #tpu.memory_space<vmem>>, vector<1x32xf32>
    %17 = vector.broadcast %16 : vector<1x32xf32> to vector<392x32xf32>
    %18 = arith.addf %15, %17 : vector<392x32xf32>
    %cst_15 = arith.constant 0.000000e+00 : f32
    %19 = vector.broadcast %cst_15 : f32 to vector<392x32xf32>
    %20 = arith.maximumf %18, %19 : vector<392x32xf32>
    %c0_16 = arith.constant 0 : index
    %c0_17 = arith.constant 0 : index
    %21 = vector.load %arg4[%c0_16, %c0_17] : memref<392x32xf32, #tpu.memory_space<vmem>>, vector<392x32xf32>
    tpu.vector_store %arg4[%c0_16, %c0_17], %20 {strides = array<i32>} : memref<392x32xf32, #tpu.memory_space<vmem>>, vector<392x32xf32>,
    return
  }
  func.func @transform_0(%arg0: i32) -> (i32, i32, i32) {
    %c0_i32 = arith.constant 0 : i32
    %c0_i32_0 = arith.constant 0 : i32
    %c0_i32_1 = arith.constant 0 : i32
    return %c0_i32, %arg0, %c0_i32_0 : i32, i32, i32
  }
  func.func @transform_1(%arg0: i32) -> (i32, i32) {
    %c0_i32 = arith.constant 0 : i32
    %c0_i32_0 = arith.constant 0 : i32
    %c0_i32_1 = arith.constant 0 : i32
    return %c0_i32, %c0_i32_0 : i32, i32
  }
  func.func @transform_2(%arg0: i32) -> (i32, i32) {
    %c0_i32 = arith.constant 0 : i32
    %c0_i32_0 = arith.constant 0 : i32
    %c0_i32_1 = arith.constant 0 : i32
    return %c0_i32, %c0_i32_0 : i32, i32
  }
  func.func @transform_3(%arg0: i32) -> (i32, i32) {
    %c0_i32 = arith.constant 0 : i32
    %c0_i32_0 = arith.constant 0 : i32
    return %arg0, %c0_i32 : i32, i32
  }
}

</mosaic_0001>

<bundles_post_ra>
// kernel: tpu_custom_call.1
= control target key start
LH: loop header
LB: loop body
LE: loop exit
PB: predicated region body
PF: predicated region fallthrough
CT: control target
= control target key end

     0   :  { %vm213_vm0 = vcmask 1040384   ;;  %v3530_v0 = vmov 0.0|0.0   ;;  %vm3531_vm1 = vmmov 1   ;;  %vm3532_vm3 = vmmov 0   ;;  %s5439_s1 = inlined_call_operand.vmem [shape: f32[9,32], index: 1, kind: input, shape index: {}]   ;;  %s5440_s0 = inlined_call_operand.vmem [shape: f32[4,392,9], index: 0, kind: input, shape index: {}]   ;;  %s5441_s2 = inlined_call_operand.vmem [shape: f32[1,32], index: 2, kind: input, shape index: {}]   ;;  %s5442_s3 = inlined_call_operand.vmem [shape: f32[392,32], index: 3, kind: output, shape index: {}]  }
   0x1   :  { %3510 = vmatprep.subr.bf16.mxu0 %v3530_v0  ;;  %v14_v1 = vld [vmem:[%s5439_s1] sm:$0xff]  ;;  %v15_v2 = vld [vmem:[%s5439_s1 + $0x8] sm:$0x1]  ;;  %vm3560_vm2 = vmpackc.low %vm213_vm0, %vm3531_vm1  ;;  %3514 = vmatprep.subr.bf16.mxu1 %v3530_v0  ;;  %v3533_v5 = vmov 0.0   ;;  %vm65_vm4 = vcmask 72704   ;;  %vm2300_vm5 = vcmask 261120  }
   0x2   :  { %v3511_v4 = vpack.c.bf16 %v15_v2, %v14_v1  ;;  %2910 = vmatprep.mubr.msk.f32.mxu0 %vm3532_vm3, %v3533_v5  ;;  %3061 = vmatprep.mubr.msk.f32.mxu1 %vm3532_vm3, %v3533_v5  ;;  %v16_v6 = vld [vmem:[%s5440_s0] sm:$0xff]  ;;  %v2404_v7 = vld [vmem:[%s5440_s0 + $0x188] sm:$0xff]  ;;  %v2405_v9 = vld [vmem:[%s5440_s0 + $0x190] sm:$0xff] }
   0x3   :  { %v17_v8 = vld [vmem:[%s5440_s0 + $0x8] sm:$0xff]  ;;  %v18_v10 = vld [vmem:[%s5440_s0 + $0x10] sm:$0xff]  ;;  %v2406_v11 = vld [vmem:[%s5440_s0 + $0x198] sm:$0xff] }
   0x4   :  { %3513 = vmatpush3.bf16.msk.msra.mxu0 %vm3560_vm2, %v3511_v4  ;;  %3517 = vmatpush3.bf16.msk.msra.mxu1 %vm3560_vm2, %v3511_v4  ;;  %v19_v12 = vld [vmem:[%s5440_s0 + $0x18] sm:$0xff]  ;;  %v2407_v13 = vld [vmem:[%s5440_s0 + $0x1a0] sm:$0xff]  ;;  %v2408_v15 = vld [vmem:[%s5440_s0 + $0x1a8] sm:$0xff] }
   0x5   :  { %3518 = vmatprep.subr.bf16.mxu0 %v3530_v0  ;;  %3522 = vmatprep.subr.bf16.mxu1 %v3530_v0  ;;  %v20_v14 = vld [vmem:[%s5440_s0 + $0x20] sm:$0xff]  ;;  %v21_v16 = vld [vmem:[%s5440_s0 + $0x28] sm:$0xff]  ;;  %v2409_v17 = vld [vmem:[%s5440_s0 + $0x1b0] sm:$0xff] }
   0x6   :  { %v22_v18 = vld [vmem:[%s5440_s0 + $0x30] sm:$0xff]  ;;  %v2410_v19 = vld [vmem:[%s5440_s0 + $0x1b8] sm:$0xff]  ;;  %v2411_v21 = vld [vmem:[%s5440_s0 + $0x1c0] sm:$0xff] }
   0x7   :  { %2911 = vmatmul.mubr.msk.f32.vlgmr.msra.gmra.mrb[0].mxu0 %vm65_vm4, %v16_v6  ;;  %3062 = vmatmul.mubr.msk.f32.vlgmr.msra.gmra.mrb[0].mxu1 %vm65_vm4, %v2404_v7  ;;  %v23_v20 = vld [vmem:[%s5440_s0 + $0x38] sm:$0xff]  ;;  %v24_v22 = vld [vmem:[%s5440_s0 + $0x40] sm:$0xff]  ;;  %v2412_v23 = vld [vmem:[%s5440_s0 + $0x1c8] sm:$0xff] }
   0x8   :  { %3521 = vmatpush3.bf16.msk.msra.mxu0 %vm3560_vm2, %v3511_v4  ;;  %2913 = vmatprep.mubr.msk.f32.mxu0 %vm3532_vm3, %v3533_v5  ;;  %v25_v24 = vld [vmem:[%s5440_s0 + $0x48] sm:$0xff]  ;;  %v2413_v25 = vld [vmem:[%s5440_s0 + $0x1d0] sm:$0xff]  ;;  %v2414_v27 = vld [vmem:[%s5440_s0 + $0x1d8] sm:$0xff] }
   0x9   :  { %3525 = vmatpush3.bf16.msk.msra.mxu1 %vm3560_vm2, %v3511_v4  ;;  %3064 = vmatprep.mubr.msk.f32.mxu1 %vm3532_vm3, %v3533_v5  ;;  %v26_v26 = vld [vmem:[%s5440_s0 + $0x50] sm:$0xff]  ;;  %v27_v28 = vld [vmem:[%s5440_s0 + $0x58] sm:$0xff]  ;;  %v2415_v29 = vld [vmem:[%s5440_s0 + $0x1e0] sm:$0xff] }
   0xa   :  { %v28_v30 = vld [vmem:[%s5440_s0 + $0x60] sm:$0xff]  ;;  %v2416_v31 = vld [vmem:[%s5440_s0 + $0x1e8] sm:$0xff]  ;;  %v2417_v33 = vld [vmem:[%s5440_s0 + $0x1f0] sm:$0xff] }
   0xb   :  { %2914 = vmatmul.mubr.msk.f32.gmra.mrb[2].mxu0 %vm65_vm4, %v17_v8  ;;  %3065 = vmatmul.mubr.msk.f32.gmra.mrb[2].mxu1 %vm65_vm4, %v2405_v9  ;;  %v29_v32 = vld [vmem:[%s5440_s0 + $0x68] sm:$0xff]  ;;  %v30_v34 = vld [vmem:[%s5440_s0 + $0x70] sm:$0xff]  ;;  %v2418_v35 = vld [vmem:[%s5440_s0 + $0x1f8] sm:$0xff] }
   0xc   :  { %2916 = vmatprep.mubr.msk.f32.mxu0 %vm3532_vm3, %v3533_v5  ;;  %3067 = vmatprep.mubr.msk.f32.mxu1 %vm3532_vm3, %v3533_v5  ;;  %v31_v36 = vld [vmem:[%s5440_s0 + $0x78] sm:$0xff]  ;;  %v2419_v37 = vld [vmem:[%s5440_s0 + $0x200] sm:$0xff]  ;;  %v2420_v39 = vld [vmem:[%s5440_s0 + $0x208] sm:$0xff] }
   0xd   :  { %v32_v38 = vld [vmem:[%s5440_s0 + $0x80] sm:$0xff]  ;;  %v33_v40 = vld [vmem:[%s5440_s0 + $0x88] sm:$0xff]  ;;  %v2421_v41 = vld [vmem:[%s5440_s0 + $0x210] sm:$0xff] }
   0xe   :  { %v34_v42 = vld [vmem:[%s5440_s0 + $0x90] sm:$0xff]  ;;  %v2422_v43 = vld [vmem:[%s5440_s0 + $0x218] sm:$0xff]  ;;  %v2423_v45 = vld [vmem:[%s5440_s0 + $0x220] sm:$0xff] }
   0xf   :  { %2917 = vmatmul.mubr.msk.f32.gmra.mrb[4].mxu0 %vm65_vm4, %v18_v10  ;;  %3068 = vmatmul.mubr.msk.f32.gmra.mrb[4].mxu1 %vm65_vm4, %v2406_v11  ;;  %v35_v44 = vld [vmem:[%s5440_s0 + $0x98] sm:$0xff]  ;;  %v36_v46 = vld [vmem:[%s5440_s0 + $0xa0] sm:$0xff]  ;;  %v2424_v47 = vld [vmem:[%s5440_s0 + $0x228] sm:$0xff] }
  0x10   :  { %2919 = vmatprep.mubr.msk.f32.mxu0 %vm3532_vm3, %v3533_v5  ;;  %3070 = vmatprep.mubr.msk.f32.mxu1 %vm3532_vm3, %v3533_v5  ;;  %v37_v48 = vld [vmem:[%s5440_s0 + $0xa8] sm:$0xff]  ;;  %v2425_v49 = vld [vmem:[%s5440_s0 + $0x230] sm:$0xff]  ;;  %v2426_v51 = vld [vmem:[%s5440_s0 + $0x238] sm:$0xff] }
  0x11   :  { %v38_v50 = vld [vmem:[%s5440_s0 + $0xb0] sm:$0xff]  ;;  %v39_v52 = vld [vmem:[%s5440_s0 + $0xb8] sm:$0xff]  ;;  %v2427_v53 = vld [vmem:[%s5440_s0 + $0x240] sm:$0xff] }
  0x12   :  { %v40_v54 = vld [vmem:[%s5440_s0 + $0xc0] sm:$0xff]  ;;  %v2428_v55 = vld [vmem:[%s5440_s0 + $0x248] sm:$0xff]  ;;  %v2429_v57 = vld [vmem:[%s5440_s0 + $0x250] sm:$0xff] }
  0x13   :  { %2920 = vmatmul.mubr.msk.f32.gmra.mrb[6].mxu0 %vm65_vm4, %v19_v12  ;;  %3071 = vmatmul.mubr.msk.f32.gmra.mrb[6].mxu1 %vm65_vm4, %v2407_v13  ;;  %v41_v56 = vld [vmem:[%s5440_s0 + $0xc8] sm:$0xff]  ;;  %v42_v58 = vld [vmem:[%s5440_s0 + $0xd0] sm:$0xff]  ;;  %v2430_v59 = vld [vmem:[%s5440_s0 + $0x258] sm:$0xff] }
  0x14   :  { %2922 = vmatprep.mubr.msk.f32.mxu0 %vm3532_vm3, %v3533_v5  ;;  %3073 = vmatprep.mubr.msk.f32.mxu1 %vm3532_vm3, %v3533_v5  ;;  %v43_v60 = vld [vmem:[%s5440_s0 + $0xd8] sm:$0xff]  ;;  %v2431_v61 = vld [vmem:[%s5440_s0 + $0x260] sm:$0xff]  ;;  %v2432_v63 = vld [vmem:[%s5440_s0 + $0x268] sm:$0xff] }
  0x15   :  { %v44_v62 = vld [vmem:[%s5440_s0 + $0xe0] sm:$0xff]  ;;  %v45_v0 = vld [vmem:[%s5440_s0 + $0xe8] sm:$0xff]  ;;  %v2433_v1 = vld [vmem:[%s5440_s0 + $0x270] sm:$0xff] }
  0x16   :  { %v46_v2 = vld [vmem:[%s5440_s0 + $0xf0] sm:$0xff]  ;;  %v2434_v3 = vld [vmem:[%s5440_s0 + $0x278] sm:$0xff]  ;;  %v2435_v6 = vld [vmem:[%s5440_s0 + $0x280] sm:$0xff] }
  0x17   :  { %2923 = vmatmul.mubr.msk.f32.gmra.mrb[8].mxu0 %vm65_vm4, %v20_v14  ;;  %3074 = vmatmul.mubr.msk.f32.gmra.mrb[8].mxu1 %vm65_vm4, %v2408_v15  ;;  %v47_v4 = vld [vmem:[%s5440_s0 + $0xf8] sm:$0xff]  ;;  %v48_v7 = vld [vmem:[%s5440_s0 + $0x100] sm:$0xff]  ;;  %v2436_v8 = vld [vmem:[%s5440_s0 + $0x288] sm:$0xff] }
  0x18   :  { %2925 = vmatprep.mubr.msk.f32.mxu0 %vm3532_vm3, %v3533_v5  ;;  %3076 = vmatprep.mubr.msk.f32.mxu1 %vm3532_vm3, %v3533_v5  ;;  %v49_v9 = vld [vmem:[%s5440_s0 + $0x108] sm:$0xff]  ;;  %v2437_v10 = vld [vmem:[%s5440_s0 + $0x290] sm:$0xff]  ;;  %v2438_v12 = vld [vmem:[%s5440_s0 + $0x298] sm:$0xff] }
  0x19   :  { %v50_v11 = vld [vmem:[%s5440_s0 + $0x110] sm:$0xff]  ;;  %v51_v13 = vld [vmem:[%s5440_s0 + $0x118] sm:$0xff]  ;;  %v2439_v14 = vld [vmem:[%s5440_s0 + $0x2a0] sm:$0xff] }
  0x1a   :  { %v52_v15 = vld [vmem:[%s5440_s0 + $0x120] sm:$0xff] }
  0x1b   :  { %2926 = vmatmul.mubr.msk.f32.gmra.mrb[10].mxu0 %vm65_vm4, %v21_v16  ;;  %3077 = vmatmul.mubr.msk.f32.gmra.mrb[10].mxu1 %vm65_vm4, %v2409_v17  ;;  %v2440_v16 = vld [vmem:[%s5440_s0 + $0x2a8] sm:$0xff] }
  0x1c   :  { %2928 = vmatprep.mubr.msk.f32.mxu0 %vm3532_vm3, %v3533_v5  ;;  %3079 = vmatprep.mubr.msk.f32.mxu1 %vm3532_vm3, %v3533_v5  ;;  %v53_v17 = vld [vmem:[%s5440_s0 + $0x128] sm:$0xff] }
  0x1f   :  { %2929 = vmatmul.mubr.msk.f32.gmra.mrb[12].mxu0 %vm65_vm4, %v22_v18  ;;  %3080 = vmatmul.mubr.msk.f32.gmra.mrb[12].mxu1 %vm65_vm4, %v2410_v19  ;;  %v2441_v18 = vld [vmem:[%s5440_s0 + $0x2b0] sm:$0xff] }
  0x20   :  { %2931 = vmatprep.mubr.msk.f32.mxu0 %vm3532_vm3, %v3533_v5  ;;  %3082 = vmatprep.mubr.msk.f32.mxu1 %vm3532_vm3, %v3533_v5  ;;  %v54_v19 = vld [vmem:[%s5440_s0 + $0x130] sm:$0xff] }
  0x23   :  { %2932 = vmatmul.mubr.msk.f32.gmra.mrb[14].mxu0 %vm65_vm4, %v23_v20  ;;  %3083 = vmatmul.mubr.msk.f32.gmra.mrb[14].mxu1 %vm65_vm4, %v2411_v21  ;;  %v2442_v20 = vld [vmem:[%s5440_s0 + $0x2b8] sm:$0xff] }
  0x24   :  { %2934 = vmatprep.mubr.msk.f32.mxu0 %vm3532_vm3, %v3533_v5  ;;  %3085 = vmatprep.mubr.msk.f32.mxu1 %vm3532_vm3, %v3533_v5  ;;  %v55_v21 = vld [vmem:[%s5440_s0 + $0x138] sm:$0xff] }
  0x27   :  { %2935 = vmatmul.mubr.msk.f32.gmra.mrb[16].mxu0 %vm65_vm4, %v24_v22  ;;  %3086 = vmatmul.mubr.msk.f32.gmra.mrb[16].mxu1 %vm65_vm4, %v2412_v23  ;;  %v2443_v22 = vld [vmem:[%s5440_s0 + $0x2c0] sm:$0xff] }
  0x28   :  { %2937 = vmatprep.mubr.msk.f32.mxu0 %vm3532_vm3, %v3533_v5  ;;  %3088 = vmatprep.mubr.msk.f32.mxu1 %vm3532_vm3, %v3533_v5  ;;  %v56_v23 = vld [vmem:[%s5440_s0 + $0x140] sm:$0xff] }
  0x2b   :  { %2938 = vmatmul.mubr.msk.f32.gmra.mrb[18].mxu0 %vm65_vm4, %v25_v24  ;;  %3089 = vmatmul.mubr.msk.f32.gmra.mrb[18].mxu1 %vm65_vm4, %v2413_v25  ;;  %v2444_v24 = vld [vmem:[%s5440_s0 + $0x2c8] sm:$0xff] }
  0x2c   :  { %2940 = vmatprep.mubr.msk.f32.mxu0 %vm3532_vm3, %v3533_v5  ;;  %3091 = vmatprep.mubr.msk.f32.mxu1 %vm3532_vm3, %v3533_v5  ;;  %v57_v25 = vld [vmem:[%s5440_s0 + $0x148] sm:$0xff] }
  0x2f   :  { %2941 = vmatmul.mubr.msk.f32.gmra.mrb[20].mxu0 %vm65_vm4, %v26_v26  ;;  %3092 = vmatmul.mubr.msk.f32.gmra.mrb[20].mxu1 %vm65_vm4, %v2414_v27  ;;  %v2445_v26 = vld [vmem:[%s5440_s0 + $0x2d0] sm:$0xff] }
  0x30   :  { %2943 = vmatprep.mubr.msk.f32.mxu0 %vm3532_vm3, %v3533_v5  ;;  %3094 = vmatprep.mubr.msk.f32.mxu1 %vm3532_vm3, %v3533_v5  ;;  %v58_v27 = vld [vmem:[%s5440_s0 + $0x150] sm:$0xff] }
  0x33   :  { %2944 = vmatmul.mubr.msk.f32.gmra.mrb[22].mxu0 %vm65_vm4, %v27_v28  ;;  %3095 = vmatmul.mubr.msk.f32.gmra.mrb[22].mxu1 %vm65_vm4, %v2415_v29  ;;  %v2446_v28 = vld [vmem:[%s5440_s0 + $0x2d8] sm:$0xff] }
  0x34   :  { %2946 = vmatprep.mubr.msk.f32.mxu0 %vm3532_vm3, %v3533_v5  ;;  %3097 = vmatprep.mubr.msk.f32.mxu1 %vm3532_vm3, %v3533_v5  ;;  %v59_v29 = vld [vmem:[%s5440_s0 + $0x158] sm:$0xff] }
  0x37   :  { %2947 = vmatmul.mubr.msk.f32.gmra.mrb[24].mxu0 %vm65_vm4, %v28_v30  ;;  %3098 = vmatmul.mubr.msk.f32.gmra.mrb[24].mxu1 %vm65_vm4, %v2416_v31  ;;  %v2447_v30 = vld [vmem:[%s5440_s0 + $0x2e0] sm:$0xff] }
  0x38   :  { %2949 = vmatprep.mubr.msk.f32.mxu0 %vm3532_vm3, %v3533_v5  ;;  %3100 = vmatprep.mubr.msk.f32.mxu1 %vm3532_vm3, %v3533_v5  ;;  %v60_v31 = vld [vmem:[%s5440_s0 + $0x160] sm:$0xff] }
  0x3b   :  { %2950 = vmatmul.mubr.msk.f32.gmra.mrb[26].mxu0 %vm65_vm4, %v29_v32  ;;  %3101 = vmatmul.mubr.msk.f32.gmra.mrb[26].mxu1 %vm65_vm4, %v2417_v33  ;;  %v2448_v32 = vld [vmem:[%s5440_s0 + $0x2e8] sm:$0xff] }
  0x3c   :  { %2952 = vmatprep.mubr.msk.f32.mxu0 %vm3532_vm3, %v3533_v5  ;;  %3103 = vmatprep.mubr.msk.f32.mxu1 %vm3532_vm3, %v3533_v5  ;;  %v61_v33 = vld [vmem:[%s5440_s0 + $0x168] sm:$0xff] }
  0x3f   :  { %2953 = vmatmul.mubr.msk.f32.gmra.mrb[28].mxu0 %vm65_vm4, %v30_v34  ;;  %3104 = vmatmul.mubr.msk.f32.gmra.mrb[28].mxu1 %vm65_vm4, %v2418_v35  ;;  %v2449_v34 = vld [vmem:[%s5440_s0 + $0x2f0] sm:$0xff] }
  0x40   :  { %2955 = vmatprep.mubr.msk.f32.mxu0 %vm3532_vm3, %v3533_v5  ;;  %3106 = vmatprep.mubr.msk.f32.mxu1 %vm3532_vm3, %v3533_v5  ;;  %v62_v35 = vld [vmem:[%s5440_s0 + $0x170] sm:$0xff] }
  0x43   :  { %2956 = vmatmul.mubr.msk.f32.gmra.mrb[30].mxu0 %vm65_vm4, %v31_v36  ;;  %3107 = vmatmul.mubr.msk.f32.gmra.mrb[30].mxu1 %vm65_vm4, %v2419_v37  ;;  %v2450_v36 = vld [vmem:[%s5440_s0 + $0x2f8] sm:$0xff] }
  0x44   :  { %2958 = vmatprep.mubr.msk.f32.mxu0 %vm3532_vm3, %v3533_v5  ;;  %3109 = vmatprep.mubr.msk.f32.mxu1 %vm3532_vm3, %v3533_v5  ;;  %v63_v37 = vld [vmem:[%s5440_s0 + $0x178] sm:$0xff] }
  0x47   :  { %2959 = vmatmul.mubr.msk.f32.gmra.mrb[32].mxu0 %vm65_vm4, %v32_v38  ;;  %3110 = vmatmul.mubr.msk.f32.gmra.mrb[32].mxu1 %vm65_vm4, %v2420_v39  ;;  %v2451_v38 = vld [vmem:[%s5440_s0 + $0x300] sm:$0xff] }
  0x48   :  { %2961 = vmatprep.mubr.msk.f32.mxu0 %vm3532_vm3, %v3533_v5  ;;  %3112 = vmatprep.mubr.msk.f32.mxu1 %vm3532_vm3, %v3533_v5  ;;  %v64_v39 = vld [vmem:[%s5440_s0 + $0x180] sm:$0xff] }
  0x4b   :  { %2962 = vmatmul.mubr.msk.f32.gmra.mrb[34].mxu0 %vm65_vm4, %v33_v40  ;;  %3113 = vmatmul.mubr.msk.f32.gmra.mrb[34].mxu1 %vm65_vm4, %v2421_v41  ;;  %v2452_v40 = vld [vmem:[%s5440_s0 + $0x308] sm:$0xff]  ;;  %v2503_v41 = vld [vmem:[%s5440_s0 + $0x310] sm:$0xff] }
  0x4c   :  { %2964 = vmatprep.mubr.msk.f32.mxu0 %vm3532_vm3, %v3533_v5  ;;  %3115 = vmatprep.mubr.msk.f32.mxu1 %vm3532_vm3, %v3533_v5 }
  0x4f   :  { %2965 = vmatmul.mubr.msk.f32.gmra.mrb[36].mxu0 %vm65_vm4, %v34_v42  ;;  %3116 = vmatmul.mubr.msk.f32.gmra.mrb[36].mxu1 %vm65_vm4, %v2422_v43  ;;  %v2602_v42 = vld [vmem:[%s5440_s0 + $0x498] sm:$0xff] }
  0x50   :  { %2967 = vmatprep.mubr.msk.f32.mxu0 %vm3532_vm3, %v3533_v5  ;;  %3118 = vmatprep.mubr.msk.f32.mxu1 %vm3532_vm3, %v3533_v5  ;;  %v2504_v43 = vld [vmem:[%s5440_s0 + $0x318] sm:$0xff] }
  0x53   :  { %2968 = vmatmul.mubr.msk.f32.gmra.mrb[38].mxu0 %vm65_vm4, %v35_v44  ;;  %3119 = vmatmul.mubr.msk.f32.gmra.mrb[38].mxu1 %vm65_vm4, %v2423_v45  ;;  %v2603_v44 = vld [vmem:[%s5440_s0 + $0x4a0] sm:$0xff] }
  0x54   :  { %2970 = vmatprep.mubr.msk.f32.mxu0 %vm3532_vm3, %v3533_v5  ;;  %3121 = vmatprep.mubr.msk.f32.mxu1 %vm3532_vm3, %v3533_v5  ;;  %v2505_v45 = vld [vmem:[%s5440_s0 + $0x320] sm:$0xff] }
  0x57   :  { %2971 = vmatmul.mubr.msk.f32.gmra.mrb[40].mxu0 %vm65_vm4, %v36_v46  ;;  %3122 = vmatmul.mubr.msk.f32.gmra.mrb[40].mxu1 %vm65_vm4, %v2424_v47  ;;  %v2604_v46 = vld [vmem:[%s5440_s0 + $0x4a8] sm:$0xff] }
  0x58   :  { %2973 = vmatprep.mubr.msk.f32.mxu0 %vm3532_vm3, %v3533_v5  ;;  %3124 = vmatprep.mubr.msk.f32.mxu1 %vm3532_vm3, %v3533_v5  ;;  %v2506_v47 = vld [vmem:[%s5440_s0 + $0x328] sm:$0xff] }
  0x5b   :  { %2974 = vmatmul.mubr.msk.f32.gmra.mrb[42].mxu0 %vm65_vm4, %v37_v48  ;;  %3125 = vmatmul.mubr.msk.f32.gmra.mrb[42].mxu1 %vm65_vm4, %v2425_v49  ;;  %v2605_v48 = vld [vmem:[%s5440_s0 + $0x4b0] sm:$0xff] }
  0x5c   :  { %2976 = vmatprep.mubr.msk.f32.mxu0 %vm3532_vm3, %v3533_v5  ;;  %3127 = vmatprep.mubr.msk.f32.mxu1 %vm3532_vm3, %v3533_v5  ;;  %v2507_v49 = vld [vmem:[%s5440_s0 + $0x330] sm:$0xff] }
  0x5f   :  { %2977 = vmatmul.mubr.msk.f32.gmra.mrb[44].mxu0 %vm65_vm4, %v38_v50  ;;  %3128 = vmatmul.mubr.msk.f32.gmra.mrb[44].mxu1 %vm65_vm4, %v2426_v51  ;;  %v2606_v50 = vld [vmem:[%s5440_s0 + $0x4b8] sm:$0xff] }
  0x60   :  { %2979 = vmatprep.mubr.msk.f32.mxu0 %vm3532_vm3, %v3533_v5  ;;  %3130 = vmatprep.mubr.msk.f32.mxu1 %vm3532_vm3, %v3533_v5 }
  0x63   :  { %2980 = vmatmul.mubr.msk.f32.gmra.mrb[46].mxu0 %vm65_vm4, %v39_v52  ;;  %3131 = vmatmul.mubr.msk.f32.gmra.mrb[46].mxu1 %vm65_vm4, %v2427_v53 }
  0x64   :  { %2982 = vmatprep.mubr.msk.f32.mxu0 %vm3532_vm3, %v3533_v5  ;;  %3133 = vmatprep.mubr.msk.f32.mxu1 %vm3532_vm3, %v3533_v5 }
  0x67   :  { %2983 = vmatmul.mubr.msk.f32.gmra.mrb[48].mxu0 %vm65_vm4, %v40_v54  ;;  %3134 = vmatmul.mubr.msk.f32.gmra.mrb[48].mxu1 %vm65_vm4, %v2428_v55 }
  0x68   :  { %2985 = vmatprep.mubr.msk.f32.mxu0 %vm3532_vm3, %v3533_v5  ;;  %3136 = vmatprep.mubr.msk.f32.mxu1 %vm3532_vm3, %v3533_v5 }
  0x6b   :  { %2986 = vmatmul.mubr.msk.f32.gmra.mrb[50].mxu0 %vm65_vm4, %v41_v56  ;;  %3137 = vmatmul.mubr.msk.f32.gmra.mrb[50].mxu1 %vm65_vm4, %v2429_v57  ;;  %v2508_v56 = vld [vmem:[%s5440_s0 + $0x338] sm:$0xff]  ;;  %v2607_v57 = vld [vmem:[%s5440_s0 + $0x4c0] sm:$0xff] }
  0x6c   :  { %2988 = vmatprep.mubr.msk.f32.mxu0 %vm3532_vm3, %v3533_v5  ;;  %3139 = vmatprep.mubr.msk.f32.mxu1 %vm3532_vm3, %v3533_v5 }
  0x6f   :  { %2989 = vmatmul.mubr.msk.f32.gmra.mrb[52].mxu0 %vm65_vm4, %v42_v58  ;;  %3140 = vmatmul.mubr.msk.f32.gmra.mrb[52].mxu1 %vm65_vm4, %v2430_v59 }
  0x70   :  { %2991 = vmatprep.mubr.msk.f32.mxu0 %vm3532_vm3, %v3533_v5  ;;  %3142 = vmatprep.mubr.msk.f32.mxu1 %vm3532_vm3, %v3533_v5 }
  0x73   :  { %2992 = vmatmul.mubr.msk.f32.gmra.mrb[54].mxu0 %vm65_vm4, %v43_v60  ;;  %3143 = vmatmul.mubr.msk.f32.gmra.mrb[54].mxu1 %vm65_vm4, %v2431_v61  ;;  %v2535_v61 = vld [vmem:[%s5440_s0 + $0x410] sm:$0xff] }
  0x74   :  { %2994 = vmatprep.mubr.msk.f32.mxu0 %vm3532_vm3, %v3533_v5  ;;  %3145 = vmatprep.mubr.msk.f32.mxu1 %vm3532_vm3, %v3533_v5 }
  0x77   :  { %2995 = vmatmul.mubr.msk.f32.gmra.mrb[56].mxu0 %vm65_vm4, %v44_v62  ;;  %3146 = vmatmul.mubr.msk.f32.gmra.mrb[56].mxu1 %vm65_vm4, %v2432_v63  ;;  %v2509_v63 = vld [vmem:[%s5440_s0 + $0x340] sm:$0xff] }
  0x78   :  { %2997 = vmatprep.mubr.msk.f32.mxu0 %vm3532_vm3, %v3533_v5  ;;  %3148 = vmatprep.mubr.msk.f32.mxu1 %vm3532_vm3, %v3533_v5 }
  0x7b   :  { %2998 = vmatmul.mubr.msk.f32.gmra.mrb[58].mxu0 %vm65_vm4, %v45_v0  ;;  %3149 = vmatmul.mubr.msk.f32.gmra.mrb[58].mxu1 %vm65_vm4, %v2433_v1  ;;  %v2608_v0 = vld [vmem:[%s5440_s0 + $0x4c8] sm:$0xff] }
  0x7c   :  { %3000 = vmatprep.mubr.msk.f32.mxu0 %vm3532_vm3, %v3533_v5  ;;  %3151 = vmatprep.mubr.msk.f32.mxu1 %vm3532_vm3, %v3533_v5 }
  0x7f   :  { %3001 = vmatmul.mubr.msk.f32.gmra.mrb[60].mxu0 %vm65_vm4, %v46_v2  ;;  %3152 = vmatmul.mubr.msk.f32.gmra.mrb[60].mxu1 %vm65_vm4, %v2434_v3 }
  0x80   :  { %3003 = vmatprep.mubr.msk.f32.mxu0 %vm3532_vm3, %v3533_v5  ;;  %3154 = vmatprep.mubr.msk.f32.mxu1 %vm3532_vm3, %v3533_v5 }
  0x83   :  { %3004 = vmatmul.mubr.msk.f32.gmra.mrb[62].mxu0 %vm65_vm4, %v47_v4  ;;  %3155 = vmatmul.mubr.msk.f32.gmra.mrb[62].mxu1 %vm65_vm4, %v2435_v6 }
  0x84   :  { %3006 = vmatprep.mubr.msk.f32.mxu0 %vm3532_vm3, %v3533_v5  ;;  %3157 = vmatprep.mubr.msk.f32.mxu1 %vm3532_vm3, %v3533_v5 }
  0x87   :  { %3007 = vmatmul.mubr.msk.f32.gmra.mrb[64].mxu0 %vm65_vm4, %v48_v7  ;;  %3158 = vmatmul.mubr.msk.f32.gmra.mrb[64].mxu1 %vm65_vm4, %v2436_v8  ;;  %v2510_v7 = vld [vmem:[%s5440_s0 + $0x348] sm:$0xff]  ;;  %v2609_v8 = vld [vmem:[%s5440_s0 + $0x4d0] sm:$0xff] }
  0x88   :  { %3009 = vmatprep.mubr.msk.f32.mxu0 %vm3532_vm3, %v3533_v5  ;;  %3160 = vmatprep.mubr.msk.f32.mxu1 %vm3532_vm3, %v3533_v5 }
  0x8b   :  { %3010 = vmatmul.mubr.msk.f32.gmra.mrb[66].mxu0 %vm65_vm4, %v49_v9  ;;  %3161 = vmatmul.mubr.msk.f32.gmra.mrb[66].mxu1 %vm65_vm4, %v2437_v10 }
  0x8c   :  { %3012 = vmatprep.mubr.msk.f32.mxu0 %vm3532_vm3, %v3533_v5  ;;  %3163 = vmatprep.mubr.msk.f32.mxu1 %vm3532_vm3, %v3533_v5 }
  0x8f   :  { %3013 = vmatmul.mubr.msk.f32.gmra.mrb[68].mxu0 %vm65_vm4, %v50_v11  ;;  %3164 = vmatmul.mubr.msk.f32.gmra.mrb[68].mxu1 %vm65_vm4, %v2438_v12  ;;  %v2534_v12 = vld [vmem:[%s5440_s0 + $0x408] sm:$0xff] }
  0x90   :  { %3015 = vmatprep.mubr.msk.f32.mxu0 %vm3532_vm3, %v3533_v5  ;;  %3166 = vmatprep.mubr.msk.f32.mxu1 %vm3532_vm3, %v3533_v5 }
  0x93   :  { %3016 = vmatmul.mubr.msk.f32.gmra.mrb[70].mxu0 %vm65_vm4, %v51_v13  ;;  %3167 = vmatmul.mubr.msk.f32.gmra.mrb[70].mxu1 %vm65_vm4, %v2439_v14  ;;  %v2511_v14 = vld [vmem:[%s5440_s0 + $0x350] sm:$0xff] }
  0x94   :  { %3018 = vmatprep.mubr.msk.f32.mxu0 %vm3532_vm3, %v3533_v5  ;;  %3169 = vmatprep.mubr.msk.f32.mxu1 %vm3532_vm3, %v3533_v5 }
  0x97   :  { %3019 = vmatmul.mubr.msk.f32.gmra.mrb[72].mxu0 %vm65_vm4, %v52_v15  ;;  %3170 = vmatmul.mubr.msk.f32.gmra.mrb[72].mxu1 %vm65_vm4, %v2440_v16  ;;  %v2610_v15 = vld [vmem:[%s5440_s0 + $0x4d8] sm:$0xff] }
  0x98   :  { %3021 = vmatprep.mubr.msk.f32.mxu0 %vm3532_vm3, %v3533_v5  ;;  %3172 = vmatprep.mubr.msk.f32.mxu1 %vm3532_vm3, %v3533_v5 }
  0x9b   :  { %3022 = vmatmul.mubr.msk.f32.gmra.mrb[74].mxu0 %vm65_vm4, %v53_v17  ;;  %3173 = vmatmul.mubr.msk.f32.gmra.mrb[74].mxu1 %vm65_vm4, %v2441_v18 }
  0x9c   :  { %3024 = vmatprep.mubr.msk.f32.mxu0 %vm3532_vm3, %v3533_v5  ;;  %3175 = vmatprep.mubr.msk.f32.mxu1 %vm3532_vm3, %v3533_v5 }
  0x9f   :  { %3025 = vmatmul.mubr.msk.f32.gmra.mrb[76].mxu0 %vm65_vm4, %v54_v19  ;;  %3176 = vmatmul.mubr.msk.f32.gmra.mrb[76].mxu1 %vm65_vm4, %v2442_v20 }
  0xa0   :  { %3027 = vmatprep.mubr.msk.f32.mxu0 %vm3532_vm3, %v3533_v5  ;;  %3178 = vmatprep.mubr.msk.f32.mxu1 %vm3532_vm3, %v3533_v5 }
  0xa3   :  { %3028 = vmatmul.mubr.msk.f32.gmra.mrb[78].mxu0 %vm65_vm4, %v55_v21  ;;  %3179 = vmatmul.mubr.msk.f32.gmra.mrb[78].mxu1 %vm65_vm4, %v2443_v22  ;;  %v2512_v21 = vld [vmem:[%s5440_s0 + $0x358] sm:$0xff]  ;;  %v2611_v22 = vld [vmem:[%s5440_s0 + $0x4e0] sm:$0xff] }
  0xa4   :  { %3030 = vmatprep.mubr.msk.f32.mxu0 %vm3532_vm3, %v3533_v5  ;;  %3181 = vmatprep.mubr.msk.f32.mxu1 %vm3532_vm3, %v3533_v5 }
  0xa7   :  { %3031 = vmatmul.mubr.msk.f32.gmra.mrb[80].mxu0 %vm65_vm4, %v56_v23  ;;  %3182 = vmatmul.mubr.msk.f32.gmra.mrb[80].mxu1 %vm65_vm4, %v2444_v24 }
  0xa8   :  { %3033 = vmatprep.mubr.msk.f32.mxu0 %vm3532_vm3, %v3533_v5  ;;  %3184 = vmatprep.mubr.msk.f32.mxu1 %vm3532_vm3, %v3533_v5 }
  0xab   :  { %3034 = vmatmul.mubr.msk.f32.gmra.mrb[82].mxu0 %vm65_vm4, %v57_v25  ;;  %3185 = vmatmul.mubr.msk.f32.gmra.mrb[82].mxu1 %vm65_vm4, %v2445_v26  ;;  %v2533_v26 = vld [vmem:[%s5440_s0 + $0x400] sm:$0xff] }
  0xac   :  { %3036 = vmatprep.mubr.msk.f32.mxu0 %vm3532_vm3, %v3533_v5  ;;  %3187 = vmatprep.mubr.msk.f32.mxu1 %vm3532_vm3, %v3533_v5 }
  0xaf   :  { %3037 = vmatmul.mubr.msk.f32.gmra.mrb[84].mxu0 %vm65_vm4, %v58_v27  ;;  %3188 = vmatmul.mubr.msk.f32.gmra.mrb[84].mxu1 %vm65_vm4, %v2446_v28  ;;  %v2513_v28 = vld [vmem:[%s5440_s0 + $0x360] sm:$0xff] }
  0xb0   :  { %3039 = vmatprep.mubr.msk.f32.mxu0 %vm3532_vm3, %v3533_v5  ;;  %3190 = vmatprep.mubr.msk.f32.mxu1 %vm3532_vm3, %v3533_v5 }
  0xb3   :  { %3040 = vmatmul.mubr.msk.f32.gmra.mrb[86].mxu0 %vm65_vm4, %v59_v29  ;;  %3191 = vmatmul.mubr.msk.f32.gmra.mrb[86].mxu1 %vm65_vm4, %v2447_v30  ;;  %v2612_v29 = vld [vmem:[%s5440_s0 + $0x4e8] sm:$0xff] }
  0xb4   :  { %3042 = vmatprep.mubr.msk.f32.mxu0 %vm3532_vm3, %v3533_v5  ;;  %3193 = vmatprep.mubr.msk.f32.mxu1 %vm3532_vm3, %v3533_v5 }
  0xb7   :  { %3043 = vmatmul.mubr.msk.f32.gmra.mrb[88].mxu0 %vm65_vm4, %v60_v31  ;;  %3194 = vmatmul.mubr.msk.f32.gmra.mrb[88].mxu1 %vm65_vm4, %v2448_v32 }
  0xb8   :  { %3045 = vmatprep.mubr.msk.f32.mxu0 %vm3532_vm3, %v3533_v5  ;;  %3196 = vmatprep.mubr.msk.f32.mxu1 %vm3532_vm3, %v3533_v5 }
  0xbb   :  { %3046 = vmatmul.mubr.msk.f32.gmra.mrb[90].mxu0 %vm65_vm4, %v61_v33  ;;  %3197 = vmatmul.mubr.msk.f32.gmra.mrb[90].mxu1 %vm65_vm4, %v2449_v34 }
  0xbc   :  { %3048 = vmatprep.mubr.msk.f32.mxu0 %vm3532_vm3, %v3533_v5  ;;  %3199 = vmatprep.mubr.msk.f32.mxu1 %vm3532_vm3, %v3533_v5 }
  0xbf   :  { %3049 = vmatmul.mubr.msk.f32.gmra.mrb[92].mxu0 %vm65_vm4, %v62_v35  ;;  %3200 = vmatmul.mubr.msk.f32.gmra.mrb[92].mxu1 %vm65_vm4, %v2450_v36  ;;  %v2514_v35 = vld [vmem:[%s5440_s0 + $0x368] sm:$0xff]  ;;  %v2613_v36 = vld [vmem:[%s5440_s0 + $0x4f0] sm:$0xff] }
  0xc0   :  { %3051 = vmatprep.mubr.msk.f32.mxu0 %vm3532_vm3, %v3533_v5  ;;  %3202 = vmatprep.mubr.msk.f32.mxu1 %vm3532_vm3, %v3533_v5 }
  0xc3   :  { %3052 = vmatmul.mubr.msk.f32.gmra.mrb[94].mxu0 %vm65_vm4, %v63_v37  ;;  %3203 = vmatmul.mubr.msk.f32.gmra.mrb[94].mxu1 %vm65_vm4, %v2451_v38 }
  0xc4   :  { %3054 = vmatprep.mubr.msk.f32.mxu0 %vm3532_vm3, %v3533_v5  ;;  %3205 = vmatprep.mubr.msk.f32.mxu1 %vm3532_vm3, %v3533_v5 }
  0xc7   :  { %3055 = vmatmul.mubr.msk.f32.gmra.mrb[96].mxu0 %vm65_vm4, %v64_v39  ;;  %3206 = vmatmul.mubr.msk.f32.gmra.mrb[96].mxu1 %vm65_vm4, %v2452_v40  ;;  %v2532_v40 = vld [vmem:[%s5440_s0 + $0x3f8] sm:$0xff] }
  0xc8   :  { %3212 = vmatprep.mubr.msk.f32.mxu0 %vm3532_vm3, %v3533_v5  ;;  %3363 = vmatprep.mubr.msk.f32.mxu1 %vm3532_vm3, %v3533_v5 }
  0xcb   :  { %3213 = vmatmul.mubr.msk.f32.vlgmr.msra.gmra.mrb[98].mxu0 %vm65_vm4, %v2503_v41  ;;  %3364 = vmatmul.mubr.msk.f32.vlgmr.msra.gmra.mrb[98].mxu1 %vm65_vm4, %v2602_v42  ;;  %v2515_v42 = vld [vmem:[%s5440_s0 + $0x370] sm:$0xff] }
  0xcc   :  { %3215 = vmatprep.mubr.msk.f32.mxu0 %vm3532_vm3, %v3533_v5  ;;  %3366 = vmatprep.mubr.msk.f32.mxu1 %vm3532_vm3, %v3533_v5 }
  0xcf   :  { %3216 = vmatmul.mubr.msk.f32.gmra.mrb[100].mxu0 %vm65_vm4, %v2504_v43  ;;  %3367 = vmatmul.mubr.msk.f32.gmra.mrb[100].mxu1 %vm65_vm4, %v2603_v44  ;;  %v2614_v43 = vld [vmem:[%s5440_s0 + $0x4f8] sm:$0xff] }
  0xd0   :  { %3218 = vmatprep.mubr.msk.f32.mxu0 %vm3532_vm3, %v3533_v5  ;;  %3369 = vmatprep.mubr.msk.f32.mxu1 %vm3532_vm3, %v3533_v5 }
  0xd3   :  { %3219 = vmatmul.mubr.msk.f32.gmra.mrb[102].mxu0 %vm65_vm4, %v2505_v45  ;;  %3370 = vmatmul.mubr.msk.f32.gmra.mrb[102].mxu1 %vm65_vm4, %v2604_v46 }
  0xd4   :  { %3221 = vmatprep.mubr.msk.f32.mxu0 %vm3532_vm3, %v3533_v5  ;;  %3372 = vmatprep.mubr.msk.f32.mxu1 %vm3532_vm3, %v3533_v5 }
  0xd7   :  { %3222 = vmatmul.mubr.msk.f32.gmra.mrb[104].mxu0 %vm65_vm4, %v2506_v47  ;;  %3373 = vmatmul.mubr.msk.f32.gmra.mrb[104].mxu1 %vm65_vm4, %v2605_v48 }
  0xd8   :  { %3224 = vmatprep.mubr.msk.f32.mxu0 %vm3532_vm3, %v3533_v5  ;;  %3375 = vmatprep.mubr.msk.f32.mxu1 %vm3532_vm3, %v3533_v5 }
  0xda   :  { %v4218_v51 = vpop.f32.mrb[0].mxu0  ;;  %v4220_v52 = vpop.f32.mrb[0].mxu1 }
  0xdb   :  { %v2912_v53 = vpop.f32.mrb[1].mxu0  ;;  %3225 = vmatmul.mubr.msk.f32.gmra.mrb[106].mxu0 %vm65_vm4, %v2507_v49  ;;  %v3063_v55 = vpop.f32.mrb[1].mxu1  ;;  %3376 = vmatmul.mubr.msk.f32.gmra.mrb[106].mxu1 %vm65_vm4, %v2606_v50  ;;  %v2516_v49 = vld [vmem:[%s5440_s0 + $0x378] sm:$0xff]  ;;  %v2615_v50 = vld [vmem:[%s5440_s0 + $0x500] sm:$0xff] }
  0xdc   :  { %3227 = vmatprep.mubr.msk.f32.mxu0 %vm3532_vm3, %v3533_v5  ;;  %3378 = vmatprep.mubr.msk.f32.mxu1 %vm3532_vm3, %v3533_v5 }
  0xde   :  { %v4236_v58 = vpop.f32.mrb[2].mxu0  ;;  %v4238_v59 = vpop.f32.mrb[2].mxu1 }
  0xdf   :  { %v2915_v60 = vpop.f32.mrb[3].mxu0  ;;  %3228 = vmatmul.mubr.msk.f32.gmra.mrb[108].mxu0 %vm65_vm4, %v2508_v56  ;;  %v3066_v62 = vpop.f32.mrb[3].mxu1  ;;  %3379 = vmatmul.mubr.msk.f32.gmra.mrb[108].mxu1 %vm65_vm4, %v2607_v57  ;;  %v2531_v57 = vld [vmem:[%s5440_s0 + $0x3f0] sm:$0xff] }
  0xe0   :  { %3230 = vmatprep.mubr.msk.f32.mxu0 %vm3532_vm3, %v3533_v5  ;;  %3381 = vmatprep.mubr.msk.f32.mxu1 %vm3532_vm3, %v3533_v5  ;;  %v2517_v62 = vld [vmem:[%s5440_s0 + $0x380] sm:$0xff] }
  0xe2   :  { %v4254_v1 = vpop.f32.mrb[4].mxu0  ;;  %v4256_v2 = vpop.f32.mrb[4].mxu1 }
  0xe3   :  { %v2918_v3 = vpop.f32.mrb[5].mxu0  ;;  %3231 = vmatmul.mubr.msk.f32.gmra.mrb[110].mxu0 %vm65_vm4, %v2509_v63  ;;  %v3069_v6 = vpop.f32.mrb[5].mxu1  ;;  %3382 = vmatmul.mubr.msk.f32.gmra.mrb[110].mxu1 %vm65_vm4, %v2608_v0  ;;  %v2616_v63 = vld [vmem:[%s5440_s0 + $0x508] sm:$0xff] }
  0xe4   :  { %3233 = vmatprep.mubr.msk.f32.mxu0 %vm3532_vm3, %v3533_v5  ;;  %3384 = vmatprep.mubr.msk.f32.mxu1 %vm3532_vm3, %v3533_v5 }
  0xe6   :  { %v4272_v9 = vpop.f32.mrb[6].mxu0  ;;  %v4274_v10 = vpop.f32.mrb[6].mxu1 }
  0xe7   :  { %v2921_v11 = vpop.f32.mrb[7].mxu0  ;;  %3234 = vmatmul.mubr.msk.f32.gmra.mrb[112].mxu0 %vm65_vm4, %v2510_v7  ;;  %v3072_v13 = vpop.f32.mrb[7].mxu1  ;;  %3385 = vmatmul.mubr.msk.f32.gmra.mrb[112].mxu1 %vm65_vm4, %v2609_v8 }
  0xe8   :  { %3236 = vmatprep.mubr.msk.f32.mxu0 %vm3532_vm3, %v3533_v5  ;;  %3387 = vmatprep.mubr.msk.f32.mxu1 %vm3532_vm3, %v3533_v5  ;;  %v2518_v11 = vld [vmem:[%s5440_s0 + $0x388] sm:$0xff]  ;;  %v2617_v13 = vld [vmem:[%s5440_s0 + $0x510] sm:$0xff] }
  0xea   :  { %v4290_v16 = vpop.f32.mrb[8].mxu0  ;;  %v4292_v17 = vpop.f32.mrb[8].mxu1 }
  0xeb   :  { %v2924_v18 = vpop.f32.mrb[9].mxu0  ;;  %3237 = vmatmul.mubr.msk.f32.gmra.mrb[114].mxu0 %vm65_vm4, %v2511_v14  ;;  %v3075_v20 = vpop.f32.mrb[9].mxu1  ;;  %3388 = vmatmul.mubr.msk.f32.gmra.mrb[114].mxu1 %vm65_vm4, %v2610_v15 }
  0xec   :  { %3239 = vmatprep.mubr.msk.f32.mxu0 %vm3532_vm3, %v3533_v5  ;;  %3390 = vmatprep.mubr.msk.f32.mxu1 %vm3532_vm3, %v3533_v5  ;;  %v2530_v20 = vld [vmem:[%s5440_s0 + $0x3e8] sm:$0xff] }
  0xee   :  { %v4308_v23 = vpop.f32.mrb[10].mxu0  ;;  %v4310_v24 = vpop.f32.mrb[10].mxu1 }
  0xef   :  { %v2927_v25 = vpop.f32.mrb[11].mxu0  ;;  %3240 = vmatmul.mubr.msk.f32.gmra.mrb[116].mxu0 %vm65_vm4, %v2512_v21  ;;  %v3078_v27 = vpop.f32.mrb[11].mxu1  ;;  %3391 = vmatmul.mubr.msk.f32.gmra.mrb[116].mxu1 %vm65_vm4, %v2611_v22  ;;  %v2519_v22 = vld [vmem:[%s5440_s0 + $0x390] sm:$0xff] }
  0xf0   :  { %3242 = vmatprep.mubr.msk.f32.mxu0 %vm3532_vm3, %v3533_v5  ;;  %3393 = vmatprep.mubr.msk.f32.mxu1 %vm3532_vm3, %v3533_v5  ;;  %v2618_v25 = vld [vmem:[%s5440_s0 + $0x518] sm:$0xff] }
  0xf2   :  { %v4326_v30 = vpop.f32.mrb[12].mxu0  ;;  %v4328_v31 = vpop.f32.mrb[12].mxu1 }
  0xf3   :  { %v2930_v32 = vpop.f32.mrb[13].mxu0  ;;  %3243 = vmatmul.mubr.msk.f32.gmra.mrb[118].mxu0 %vm65_vm4, %v2513_v28  ;;  %v3081_v34 = vpop.f32.mrb[13].mxu1  ;;  %3394 = vmatmul.mubr.msk.f32.gmra.mrb[118].mxu1 %vm65_vm4, %v2612_v29 }
  0xf4   :  { %3245 = vmatprep.mubr.msk.f32.mxu0 %vm3532_vm3, %v3533_v5  ;;  %3396 = vmatprep.mubr.msk.f32.mxu1 %vm3532_vm3, %v3533_v5 }
  0xf6   :  { %v4344_v37 = vpop.f32.mrb[14].mxu0  ;;  %v4346_v38 = vpop.f32.mrb[14].mxu1 }
  0xf7   :  { %v2933_v39 = vpop.f32.mrb[15].mxu0  ;;  %3246 = vmatmul.mubr.msk.f32.gmra.mrb[120].mxu0 %vm65_vm4, %v2514_v35  ;;  %v3084_v41 = vpop.f32.mrb[15].mxu1  ;;  %3397 = vmatmul.mubr.msk.f32.gmra.mrb[120].mxu1 %vm65_vm4, %v2613_v36  ;;  %v2520_v35 = vld [vmem:[%s5440_s0 + $0x398] sm:$0xff]  ;;  %v2619_v36 = vld [vmem:[%s5440_s0 + $0x520] sm:$0xff] }
  0xf8   :  { %3248 = vmatprep.mubr.msk.f32.mxu0 %vm3532_vm3, %v3533_v5  ;;  %3399 = vmatprep.mubr.msk.f32.mxu1 %vm3532_vm3, %v3533_v5 }
  0xfa   :  { %v4362_v44 = vpop.f32.mrb[16].mxu0  ;;  %v4364_v45 = vpop.f32.mrb[16].mxu1 }
  0xfb   :  { %v2936_v46 = vpop.f32.mrb[17].mxu0  ;;  %3249 = vmatmul.mubr.msk.f32.gmra.mrb[122].mxu0 %vm65_vm4, %v2515_v42  ;;  %v3087_v48 = vpop.f32.mrb[17].mxu1  ;;  %3400 = vmatmul.mubr.msk.f32.gmra.mrb[122].mxu1 %vm65_vm4, %v2614_v43  ;;  %v2529_v43 = vld [vmem:[%s5440_s0 + $0x3e0] sm:$0xff] }
  0xfc   :  { %3251 = vmatprep.mubr.msk.f32.mxu0 %vm3532_vm3, %v3533_v5  ;;  %3402 = vmatprep.mubr.msk.f32.mxu1 %vm3532_vm3, %v3533_v5  ;;  %v2521_v48 = vld [vmem:[%s5440_s0 + $0x3a0] sm:$0xff] }
  0xfe   :  { %v4380_v53 = vpop.f32.mrb[18].mxu0  ;;  %v4382_v55 = vpop.f32.mrb[18].mxu1 }
  0xff   :  { %v2939_v56 = vpop.f32.mrb[19].mxu0  ;;  %3252 = vmatmul.mubr.msk.f32.gmra.mrb[124].mxu0 %vm65_vm4, %v2516_v49  ;;  %v3090_v60 = vpop.f32.mrb[19].mxu1  ;;  %3403 = vmatmul.mubr.msk.f32.gmra.mrb[124].mxu1 %vm65_vm4, %v2615_v50  ;;  %v2620_v49 = vld [vmem:[%s5440_s0 + $0x528] sm:$0xff] }
 0x100   :  { %3254 = vmatprep.mubr.msk.f32.mxu0 %vm3532_vm3, %v3533_v5  ;;  %3405 = vmatprep.mubr.msk.f32.mxu1 %vm3532_vm3, %v3533_v5 }
 0x102   :  { %v4398_v0 = vpop.f32.mrb[20].mxu0  ;;  %v4400_v3 = vpop.f32.mrb[20].mxu1 }
 0x103   :  { %v2942_v6 = vpop.f32.mrb[21].mxu0  ;;  %3255 = vmatmul.mubr.msk.f32.gmra.mrb[126].mxu0 %vm65_vm4, %v2517_v62  ;;  %v3093_v8 = vpop.f32.mrb[21].mxu1  ;;  %3406 = vmatmul.mubr.msk.f32.gmra.mrb[126].mxu1 %vm65_vm4, %v2616_v63 }
 0x104   :  { %3257 = vmatprep.mubr.msk.f32.mxu0 %vm3532_vm3, %v3533_v5  ;;  %3408 = vmatprep.mubr.msk.f32.mxu1 %vm3532_vm3, %v3533_v5  ;;  %v2522_v6 = vld [vmem:[%s5440_s0 + $0x3a8] sm:$0xff]  ;;  %v2621_v8 = vld [vmem:[%s5440_s0 + $0x530] sm:$0xff] }
 0x106   :  { %v4416_v14 = vpop.f32.mrb[22].mxu0  ;;  %v4418_v15 = vpop.f32.mrb[22].mxu1 }
 0x107   :  { %v2945_v18 = vpop.f32.mrb[23].mxu0  ;;  %3258 = vmatmul.mubr.msk.f32.gmra.mrb[128].mxu0 %vm65_vm4, %v2518_v11  ;;  %v3096_v21 = vpop.f32.mrb[23].mxu1  ;;  %3409 = vmatmul.mubr.msk.f32.gmra.mrb[128].mxu1 %vm65_vm4, %v2617_v13 }
 0x108   :  { %3260 = vmatprep.mubr.msk.f32.mxu0 %vm3532_vm3, %v3533_v5  ;;  %3411 = vmatprep.mubr.msk.f32.mxu1 %vm3532_vm3, %v3533_v5  ;;  %v2528_v21 = vld [vmem:[%s5440_s0 + $0x3d8] sm:$0xff] }
 0x10a   :  { %v4434_v27 = vpop.f32.mrb[24].mxu0  ;;  %v4436_v28 = vpop.f32.mrb[24].mxu1 }
 0x10b   :  { %v2948_v29 = vpop.f32.mrb[25].mxu0  ;;  %3261 = vmatmul.mubr.msk.f32.gmra.mrb[130].mxu0 %vm65_vm4, %v2519_v22  ;;  %v3099_v34 = vpop.f32.mrb[25].mxu1  ;;  %3412 = vmatmul.mubr.msk.f32.gmra.mrb[130].mxu1 %vm65_vm4, %v2618_v25  ;;  %v2523_v25 = vld [vmem:[%s5440_s0 + $0x3b0] sm:$0xff] }
 0x10c   :  { %3263 = vmatprep.mubr.msk.f32.mxu0 %vm3532_vm3, %v3533_v5  ;;  %3414 = vmatprep.mubr.msk.f32.mxu1 %vm3532_vm3, %v3533_v5  ;;  %v2622_v29 = vld [vmem:[%s5440_s0 + $0x538] sm:$0xff] }
 0x10e   :  { %v4452_v39 = vpop.f32.mrb[26].mxu0  ;;  %v4454_v41 = vpop.f32.mrb[26].mxu1 }
 0x10f   :  { %v2951_v42 = vpop.f32.mrb[27].mxu0  ;;  %3264 = vmatmul.mubr.msk.f32.gmra.mrb[132].mxu0 %vm65_vm4, %v2520_v35  ;;  %v3102_v46 = vpop.f32.mrb[27].mxu1  ;;  %3415 = vmatmul.mubr.msk.f32.gmra.mrb[132].mxu1 %vm65_vm4, %v2619_v36 }
 0x110   :  { %3266 = vmatprep.mubr.msk.f32.mxu0 %vm3532_vm3, %v3533_v5  ;;  %3417 = vmatprep.mubr.msk.f32.mxu1 %vm3532_vm3, %v3533_v5 }
 0x112   :  { %v4470_v50 = vpop.f32.mrb[28].mxu0  ;;  %v4472_v56 = vpop.f32.mrb[28].mxu1 }
 0x113   :  { %v2954_v60 = vpop.f32.mrb[29].mxu0  ;;  %3267 = vmatmul.mubr.msk.f32.gmra.mrb[134].mxu0 %vm65_vm4, %v2521_v48  ;;  %v3105_v63 = vpop.f32.mrb[29].mxu1  ;;  %3418 = vmatmul.mubr.msk.f32.gmra.mrb[134].mxu1 %vm65_vm4, %v2620_v49  ;;  %v2524_v48 = vld [vmem:[%s5440_s0 + $0x3b8] sm:$0xff]  ;;  %v2623_v49 = vld [vmem:[%s5440_s0 + $0x540] sm:$0xff] }
 0x114   :  { %3269 = vmatprep.mubr.msk.f32.mxu0 %vm3532_vm3, %v3533_v5  ;;  %3420 = vmatprep.mubr.msk.f32.mxu1 %vm3532_vm3, %v3533_v5 }
 0x116   :  { %v4488_v11 = vpop.f32.mrb[30].mxu0  ;;  %v4490_v13 = vpop.f32.mrb[30].mxu1 }
 0x117   :  { %v2957_v18 = vpop.f32.mrb[31].mxu0  ;;  %3270 = vmatmul.mubr.msk.f32.gmra.mrb[136].mxu0 %vm65_vm4, %v2522_v6  ;;  %v3108_v22 = vpop.f32.mrb[31].mxu1  ;;  %3421 = vmatmul.mubr.msk.f32.gmra.mrb[136].mxu1 %vm65_vm4, %v2621_v8  ;;  %v2527_v8 = vld [vmem:[%s5440_s0 + $0x3d0] sm:$0xff] }
 0x118   :  { %3272 = vmatprep.mubr.msk.f32.mxu0 %vm3532_vm3, %v3533_v5  ;;  %3423 = vmatprep.mubr.msk.f32.mxu1 %vm3532_vm3, %v3533_v5  ;;  %v2525_v22 = vld [vmem:[%s5440_s0 + $0x3c0] sm:$0xff] }
 0x11a   :  { %v4506_v34 = vpop.f32.mrb[32].mxu0  ;;  %v4508_v35 = vpop.f32.mrb[32].mxu1 }
 0x11b   :  { %v2960_v36 = vpop.f32.mrb[33].mxu0  ;;  %3273 = vmatmul.mubr.msk.f32.gmra.mrb[138].mxu0 %vm65_vm4, %v2523_v25  ;;  %v3111_v46 = vpop.f32.mrb[33].mxu1  ;;  %3424 = vmatmul.mubr.msk.f32.gmra.mrb[138].mxu1 %vm65_vm4, %v2622_v29  ;;  %v2624_v25 = vld [vmem:[%s5440_s0 + $0x548] sm:$0xff] }
 0x11c   :  { %3275 = vmatprep.mubr.msk.f32.mxu0 %vm3532_vm3, %v3533_v5  ;;  %3426 = vmatprep.mubr.msk.f32.mxu1 %vm3532_vm3, %v3533_v5 }
 0x11e   :  { %v4524_v60 = vpop.f32.mrb[34].mxu0  ;;  %v4526_v63 = vpop.f32.mrb[34].mxu1 }
 0x11f   :  { %v2963_v6 = vpop.f32.mrb[35].mxu0  ;;  %3276 = vmatmul.mubr.msk.f32.gmra.mrb[140].mxu0 %vm65_vm4, %v2524_v48  ;;  %v3114_v18 = vpop.f32.mrb[35].mxu1  ;;  %3427 = vmatmul.mubr.msk.f32.gmra.mrb[140].mxu1 %vm65_vm4, %v2623_v49 }
 0x120   :  { %3278 = vmatprep.mubr.msk.f32.mxu0 %vm3532_vm3, %v3533_v5  ;;  %3429 = vmatprep.mubr.msk.f32.mxu1 %vm3532_vm3, %v3533_v5  ;;  %v2526_v6 = vld [vmem:[%s5440_s0 + $0x3c8] sm:$0xff]  ;;  %v2625_v18 = vld [vmem:[%s5440_s0 + $0x550] sm:$0xff] }
 0x122   :  { %v4542_v29 = vpop.f32.mrb[36].mxu0  ;;  %v4544_v36 = vpop.f32.mrb[36].mxu1 }
 0x123   :  { %v2966_v46 = vpop.f32.mrb[37].mxu0  ;;  %3279 = vmatmul.mubr.msk.f32.gmra.mrb[142].mxu0 %vm65_vm4, %v2525_v22  ;;  %v3117_v49 = vpop.f32.mrb[37].mxu1  ;;  %3430 = vmatmul.mubr.msk.f32.gmra.mrb[142].mxu1 %vm65_vm4, %v2624_v25 }
 0x124   :  { %3281 = vmatprep.mubr.msk.f32.mxu0 %vm3532_vm3, %v3533_v5  ;;  %3432 = vmatprep.mubr.msk.f32.mxu1 %vm3532_vm3, %v3533_v5 }
 0x126   :  { %v4560_v46 = vpop.f32.mrb[38].mxu0  ;;  %v4562_v22 = vpop.f32.mrb[38].mxu1 }
 0x127   :  { %v2969_v49 = vpop.f32.mrb[39].mxu0  ;;  %3282 = vmatmul.mubr.msk.f32.gmra.mrb[144].mxu0 %vm65_vm4, %v2526_v6  ;;  %v3120_v48 = vpop.f32.mrb[39].mxu1  ;;  %3433 = vmatmul.mubr.msk.f32.gmra.mrb[144].mxu1 %vm65_vm4, %v2625_v18 }
 0x128   :  { %3284 = vmatprep.mubr.msk.f32.mxu0 %vm3532_vm3, %v3533_v5  ;;  %3435 = vmatprep.mubr.msk.f32.mxu1 %vm3532_vm3, %v3533_v5  ;;  %v2626_v49 = vld [vmem:[%s5440_s0 + $0x558] sm:$0xff] }
 0x12a   :  { %v4578_v25 = vpop.f32.mrb[40].mxu0  ;;  %v4580_v6 = vpop.f32.mrb[40].mxu1 }
 0x12b   :  { %v2972_v48 = vpop.f32.mrb[41].mxu0  ;;  %3285 = vmatmul.mubr.msk.f32.gmra.mrb[146].mxu0 %vm65_vm4, %v2527_v8  ;;  %v3123_v42 = vpop.f32.mrb[41].mxu1  ;;  %3436 = vmatmul.mubr.msk.f32.gmra.mrb[146].mxu1 %vm65_vm4, %v2626_v49 }
 0x12c   :  { %3287 = vmatprep.mubr.msk.f32.mxu0 %vm3532_vm3, %v3533_v5  ;;  %3438 = vmatprep.mubr.msk.f32.mxu1 %vm3532_vm3, %v3533_v5  ;;  %v2627_v48 = vld [vmem:[%s5440_s0 + $0x560] sm:$0xff] }
 0x12e   :  { %v4596_v18 = vpop.f32.mrb[42].mxu0  ;;  %v4598_v8 = vpop.f32.mrb[42].mxu1 }
 0x12f   :  { %v2975_v42 = vpop.f32.mrb[43].mxu0  ;;  %3288 = vmatmul.mubr.msk.f32.gmra.mrb[148].mxu0 %vm65_vm4, %v2528_v21  ;;  %v3126_v62 = vpop.f32.mrb[43].mxu1  ;;  %3439 = vmatmul.mubr.msk.f32.gmra.mrb[148].mxu1 %vm65_vm4, %v2627_v48 }
 0x130   :  { %3290 = vmatprep.mubr.msk.f32.mxu0 %vm3532_vm3, %v3533_v5  ;;  %3441 = vmatprep.mubr.msk.f32.mxu1 %vm3532_vm3, %v3533_v5  ;;  %v2628_v42 = vld [vmem:[%s5440_s0 + $0x568] sm:$0xff] }
 0x132   :  { %v4614_v49 = vpop.f32.mrb[44].mxu0  ;;  %v4616_v21 = vpop.f32.mrb[44].mxu1 }
 0x133   :  { %v2978_v62 = vpop.f32.mrb[45].mxu0  ;;  %3291 = vmatmul.mubr.msk.f32.gmra.mrb[150].mxu0 %vm65_vm4, %v2529_v43  ;;  %v3129_v32 = vpop.f32.mrb[45].mxu1  ;;  %3442 = vmatmul.mubr.msk.f32.gmra.mrb[150].mxu1 %vm65_vm4, %v2628_v42 }
 0x134   :  { %3293 = vmatprep.mubr.msk.f32.mxu0 %vm3532_vm3, %v3533_v5  ;;  %3444 = vmatprep.mubr.msk.f32.mxu1 %vm3532_vm3, %v3533_v5  ;;  %v2629_v62 = vld [vmem:[%s5440_s0 + $0x570] sm:$0xff] }
 0x136   :  { %v4632_v48 = vpop.f32.mrb[46].mxu0  ;;  %v4634_v43 = vpop.f32.mrb[46].mxu1 }
 0x137   :  { %v2981_v32 = vpop.f32.mrb[47].mxu0  ;;  %3294 = vmatmul.mubr.msk.f32.gmra.mrb[152].mxu0 %vm65_vm4, %v2530_v20  ;;  %v3132_v7 = vpop.f32.mrb[47].mxu1  ;;  %3445 = vmatmul.mubr.msk.f32.gmra.mrb[152].mxu1 %vm65_vm4, %v2629_v62 }
 0x138   :  { %3296 = vmatprep.mubr.msk.f32.mxu0 %vm3532_vm3, %v3533_v5  ;;  %3447 = vmatprep.mubr.msk.f32.mxu1 %vm3532_vm3, %v3533_v5  ;;  %v2630_v32 = vld [vmem:[%s5440_s0 + $0x578] sm:$0xff] }
 0x13a   :  { %v4650_v42 = vpop.f32.mrb[48].mxu0  ;;  %v4652_v20 = vpop.f32.mrb[48].mxu1 }
 0x13b   :  { %5494 = vst [vmem:[#allocation2_spill] sm:$0xff] %v4652_v20  ;;  %v2984_v7 = vpop.f32.mrb[49].mxu0  ;;  %3297 = vmatmul.mubr.msk.f32.gmra.mrb[154].mxu0 %vm65_vm4, %v2531_v57  ;;  %v3135_v47 = vpop.f32.mrb[49].mxu1  ;;  %3448 = vmatmul.mubr.msk.f32.gmra.mrb[154].mxu1 %vm65_vm4, %v2630_v32 }
 0x13c   :  { %3299 = vmatprep.mubr.msk.f32.mxu0 %vm3532_vm3, %v3533_v5  ;;  %3450 = vmatprep.mubr.msk.f32.mxu1 %vm3532_vm3, %v3533_v5  ;;  %v2631_v7 = vld [vmem:[%s5440_s0 + $0x580] sm:$0xff] }
 0x13e   :  { %v4668_v62 = vpop.f32.mrb[50].mxu0  ;;  %v4670_v57 = vpop.f32.mrb[50].mxu1 }
 0x13f   :  { %5495 = vst [vmem:[#allocation3_spill] sm:$0xff] %v4668_v62  ;;  %5496 = vst [vmem:[#allocation4_spill] sm:$0xff] %v4670_v57  ;;  %v2987_v47 = vpop.f32.mrb[51].mxu0  ;;  %3300 = vmatmul.mubr.msk.f32.gmra.mrb[156].mxu0 %vm65_vm4, %v2532_v40  ;;  %v3138_v33 = vpop.f32.mrb[51].mxu1  ;;  %3451 = vmatmul.mubr.msk.f32.gmra.mrb[156].mxu1 %vm65_vm4, %v2631_v7 }
 0x140   :  { %3302 = vmatprep.mubr.msk.f32.mxu0 %vm3532_vm3, %v3533_v5  ;;  %3453 = vmatprep.mubr.msk.f32.mxu1 %vm3532_vm3, %v3533_v5  ;;  %v2632_v47 = vld [vmem:[%s5440_s0 + $0x588] sm:$0xff] }
 0x142   :  { %v4686_v32 = vpop.f32.mrb[52].mxu0  ;;  %v4688_v40 = vpop.f32.mrb[52].mxu1 }
 0x143   :  { %5497 = vst [vmem:[#allocation5_spill] sm:$0xff] %v4686_v32  ;;  %5498 = vst [vmem:[#allocation6_spill] sm:$0xff] %v4688_v40  ;;  %v2990_v33 = vpop.f32.mrb[53].mxu0  ;;  %3303 = vmatmul.mubr.msk.f32.gmra.mrb[158].mxu0 %vm65_vm4, %v2533_v26  ;;  %v3141_v19 = vpop.f32.mrb[53].mxu1  ;;  %3454 = vmatmul.mubr.msk.f32.gmra.mrb[158].mxu1 %vm65_vm4, %v2632_v47 }
 0x144   :  { %3305 = vmatprep.mubr.msk.f32.mxu0 %vm3532_vm3, %v3533_v5  ;;  %3456 = vmatprep.mubr.msk.f32.mxu1 %vm3532_vm3, %v3533_v5  ;;  %v2633_v33 = vld [vmem:[%s5440_s0 + $0x590] sm:$0xff] }
 0x146   :  { %v4704_v7 = vpop.f32.mrb[54].mxu0  ;;  %v4706_v26 = vpop.f32.mrb[54].mxu1 }
 0x147   :  { %5499 = vst [vmem:[#allocation7_spill] sm:$0xff] %v4704_v7  ;;  %5500 = vst [vmem:[#allocation8_spill] sm:$0xff] %v4706_v26  ;;  %v2993_v19 = vpop.f32.mrb[55].mxu0  ;;  %3306 = vmatmul.mubr.msk.f32.gmra.mrb[160].mxu0 %vm65_vm4, %v2534_v12  ;;  %v3144_v4 = vpop.f32.mrb[55].mxu1  ;;  %3457 = vmatmul.mubr.msk.f32.gmra.mrb[160].mxu1 %vm65_vm4, %v2633_v33  ;;  %v2536_v26 = vld [vmem:[%s5440_s0 + $0x418] sm:$0xff] }
 0x148   :  { %3308 = vmatprep.mubr.msk.f32.mxu0 %vm3532_vm3, %v3533_v5  ;;  %3459 = vmatprep.mubr.msk.f32.mxu1 %vm3532_vm3, %v3533_v5  ;;  %v2634_v19 = vld [vmem:[%s5440_s0 + $0x598] sm:$0xff] }
 0x14a   :  { %v4722_v47 = vpop.f32.mrb[56].mxu0  ;;  %v4724_v12 = vpop.f32.mrb[56].mxu1 }
 0x14b   :  { %5501 = vst [vmem:[#allocation9_spill] sm:$0xff] %v4722_v47  ;;  %5502 = vst [vmem:[#allocation10_spill] sm:$0xff] %v4724_v12  ;;  %v2996_v4 = vpop.f32.mrb[57].mxu0  ;;  %3309 = vmatmul.mubr.msk.f32.gmra.mrb[162].mxu0 %vm65_vm4, %v2535_v61  ;;  %v3147_v54 = vpop.f32.mrb[57].mxu1  ;;  %3460 = vmatmul.mubr.msk.f32.gmra.mrb[162].mxu1 %vm65_vm4, %v2634_v19  ;;  %v2537_v47 = vld [vmem:[%s5440_s0 + $0x420] sm:$0xff] }
 0x14c   :  { %3311 = vmatprep.mubr.msk.f32.mxu0 %vm3532_vm3, %v3533_v5  ;;  %3462 = vmatprep.mubr.msk.f32.mxu1 %vm3532_vm3, %v3533_v5  ;;  %v2635_v4 = vld [vmem:[%s5440_s0 + $0x5a0] sm:$0xff] }
 0x14e   :  { %v4740_v33 = vpop.f32.mrb[58].mxu0  ;;  %v4742_v61 = vpop.f32.mrb[58].mxu1 }
 0x14f   :  { %5503 = vst [vmem:[#allocation11_spill] sm:$0xff] %v4740_v33  ;;  %5504 = vst [vmem:[#allocation12_spill] sm:$0xff] %v4742_v61  ;;  %v2999_v54 = vpop.f32.mrb[59].mxu0  ;;  %3312 = vmatmul.mubr.msk.f32.gmra.mrb[164].mxu0 %vm65_vm4, %v2536_v26  ;;  %v3150_v12 = vpop.f32.mrb[59].mxu1  ;;  %3463 = vmatmul.mubr.msk.f32.gmra.mrb[164].mxu1 %vm65_vm4, %v2635_v4  ;;  %v2538_v33 = vld [vmem:[%s5440_s0 + $0x428] sm:$0xff] }
 0x150   :  { %3314 = vmatprep.mubr.msk.f32.mxu0 %vm3532_vm3, %v3533_v5  ;;  %3465 = vmatprep.mubr.msk.f32.mxu1 %vm3532_vm3, %v3533_v5  ;;  %v2636_v54 = vld [vmem:[%s5440_s0 + $0x5a8] sm:$0xff] }
 0x152   :  { %v4758_v19 = vpop.f32.mrb[60].mxu0  ;;  %v4760_v26 = vpop.f32.mrb[60].mxu1 }
 0x153   :  { %5505 = vst [vmem:[#allocation13_spill] sm:$0xff] %v4758_v19  ;;  %5506 = vst [vmem:[#allocation14_spill] sm:$0xff] %v4760_v26  ;;  %v3002_v12 = vpop.f32.mrb[61].mxu0  ;;  %3315 = vmatmul.mubr.msk.f32.gmra.mrb[166].mxu0 %vm65_vm4, %v2537_v47  ;;  %v3153_v61 = vpop.f32.mrb[61].mxu1  ;;  %3466 = vmatmul.mubr.msk.f32.gmra.mrb[166].mxu1 %vm65_vm4, %v2636_v54  ;;  %v2539_v19 = vld [vmem:[%s5440_s0 + $0x430] sm:$0xff] }
 0x154   :  { %3317 = vmatprep.mubr.msk.f32.mxu0 %vm3532_vm3, %v3533_v5  ;;  %3468 = vmatprep.mubr.msk.f32.mxu1 %vm3532_vm3, %v3533_v5  ;;  %v2637_v12 = vld [vmem:[%s5440_s0 + $0x5b0] sm:$0xff] }
 0x156   :  { %v4776_v4 = vpop.f32.mrb[62].mxu0  ;;  %v4778_v47 = vpop.f32.mrb[62].mxu1 }
 0x157   :  { %5507 = vst [vmem:[#allocation15_spill] sm:$0xff] %v4776_v4  ;;  %5508 = vst [vmem:[#allocation16_spill] sm:$0xff] %v4778_v47  ;;  %v3005_v61 = vpop.f32.mrb[63].mxu0  ;;  %3318 = vmatmul.mubr.msk.f32.gmra.mrb[168].mxu0 %vm65_vm4, %v2538_v33  ;;  %v3156_v26 = vpop.f32.mrb[63].mxu1  ;;  %3469 = vmatmul.mubr.msk.f32.gmra.mrb[168].mxu1 %vm65_vm4, %v2637_v12  ;;  %v2540_v4 = vld [vmem:[%s5440_s0 + $0x438] sm:$0xff] }
 0x158   :  { %3320 = vmatprep.mubr.msk.f32.mxu0 %vm3532_vm3, %v3533_v5  ;;  %3471 = vmatprep.mubr.msk.f32.mxu1 %vm3532_vm3, %v3533_v5  ;;  %v2638_v61 = vld [vmem:[%s5440_s0 + $0x5b8] sm:$0xff] }
 0x15a   :  { %v4794_v54 = vpop.f32.mrb[64].mxu0  ;;  %v4796_v33 = vpop.f32.mrb[64].mxu1 }
 0x15b   :  { %5509 = vst [vmem:[#allocation17_spill] sm:$0xff] %v4794_v54  ;;  %5510 = vst [vmem:[#allocation18_spill] sm:$0xff] %v4796_v33  ;;  %v3008_v26 = vpop.f32.mrb[65].mxu0  ;;  %3321 = vmatmul.mubr.msk.f32.gmra.mrb[170].mxu0 %vm65_vm4, %v2539_v19  ;;  %v3159_v47 = vpop.f32.mrb[65].mxu1  ;;  %3472 = vmatmul.mubr.msk.f32.gmra.mrb[170].mxu1 %vm65_vm4, %v2638_v61  ;;  %v2541_v54 = vld [vmem:[%s5440_s0 + $0x440] sm:$0xff] }
 0x15c   :  { %3323 = vmatprep.mubr.msk.f32.mxu0 %vm3532_vm3, %v3533_v5  ;;  %3474 = vmatprep.mubr.msk.f32.mxu1 %vm3532_vm3, %v3533_v5  ;;  %v2639_v26 = vld [vmem:[%s5440_s0 + $0x5c0] sm:$0xff] }
 0x15e   :  { %v4812_v12 = vpop.f32.mrb[66].mxu0  ;;  %v4814_v19 = vpop.f32.mrb[66].mxu1 }
 0x15f   :  { %5511 = vst [vmem:[#allocation19_spill] sm:$0xff] %v4812_v12  ;;  %5512 = vst [vmem:[#allocation20_spill] sm:$0xff] %v4814_v19  ;;  %v3011_v47 = vpop.f32.mrb[67].mxu0  ;;  %3324 = vmatmul.mubr.msk.f32.gmra.mrb[172].mxu0 %vm65_vm4, %v2540_v4  ;;  %v3162_v33 = vpop.f32.mrb[67].mxu1  ;;  %3475 = vmatmul.mubr.msk.f32.gmra.mrb[172].mxu1 %vm65_vm4, %v2639_v26  ;;  %v2542_v12 = vld [vmem:[%s5440_s0 + $0x448] sm:$0xff] }
 0x160   :  { %3326 = vmatprep.mubr.msk.f32.mxu0 %vm3532_vm3, %v3533_v5  ;;  %3477 = vmatprep.mubr.msk.f32.mxu1 %vm3532_vm3, %v3533_v5  ;;  %v2640_v47 = vld [vmem:[%s5440_s0 + $0x5c8] sm:$0xff] }
 0x162   :  { %v4830_v61 = vpop.f32.mrb[68].mxu0  ;;  %v4832_v4 = vpop.f32.mrb[68].mxu1 }
 0x163   :  { %5513 = vst [vmem:[#allocation21_spill] sm:$0xff] %v4830_v61  ;;  %5514 = vst [vmem:[#allocation22_spill] sm:$0xff] %v4832_v4  ;;  %v3014_v33 = vpop.f32.mrb[69].mxu0  ;;  %3327 = vmatmul.mubr.msk.f32.gmra.mrb[174].mxu0 %vm65_vm4, %v2541_v54  ;;  %v3165_v19 = vpop.f32.mrb[69].mxu1  ;;  %3478 = vmatmul.mubr.msk.f32.gmra.mrb[174].mxu1 %vm65_vm4, %v2640_v47  ;;  %v2543_v61 = vld [vmem:[%s5440_s0 + $0x450] sm:$0xff] }
 0x164   :  { %3329 = vmatprep.mubr.msk.f32.mxu0 %vm3532_vm3, %v3533_v5  ;;  %3480 = vmatprep.mubr.msk.f32.mxu1 %vm3532_vm3, %v3533_v5  ;;  %v2641_v33 = vld [vmem:[%s5440_s0 + $0x5d0] sm:$0xff] }
 0x166   :  { %v4848_v26 = vpop.f32.mrb[70].mxu0  ;;  %v4850_v54 = vpop.f32.mrb[70].mxu1 }
 0x167   :  { %5515 = vst [vmem:[#allocation23_spill] sm:$0xff] %v4848_v26  ;;  %5516 = vst [vmem:[#allocation24_spill] sm:$0xff] %v4850_v54  ;;  %v3017_v19 = vpop.f32.mrb[71].mxu0  ;;  %3330 = vmatmul.mubr.msk.f32.gmra.mrb[176].mxu0 %vm65_vm4, %v2542_v12  ;;  %v3168_v4 = vpop.f32.mrb[71].mxu1  ;;  %3481 = vmatmul.mubr.msk.f32.gmra.mrb[176].mxu1 %vm65_vm4, %v2641_v33  ;;  %v2544_v26 = vld [vmem:[%s5440_s0 + $0x458] sm:$0xff] }
 0x168   :  { %3332 = vmatprep.mubr.msk.f32.mxu0 %vm3532_vm3, %v3533_v5  ;;  %3483 = vmatprep.mubr.msk.f32.mxu1 %vm3532_vm3, %v3533_v5  ;;  %v2642_v19 = vld [vmem:[%s5440_s0 + $0x5d8] sm:$0xff] }
 0x16a   :  { %v4866_v47 = vpop.f32.mrb[72].mxu0  ;;  %v4868_v12 = vpop.f32.mrb[72].mxu1 }
 0x16b   :  { %5517 = vst [vmem:[#allocation25_spill] sm:$0xff] %v4866_v47  ;;  %5518 = vst [vmem:[#allocation26_spill] sm:$0xff] %v4868_v12  ;;  %v3020_v4 = vpop.f32.mrb[73].mxu0  ;;  %3333 = vmatmul.mubr.msk.f32.gmra.mrb[178].mxu0 %vm65_vm4, %v2543_v61  ;;  %v3171_v54 = vpop.f32.mrb[73].mxu1  ;;  %3484 = vmatmul.mubr.msk.f32.gmra.mrb[178].mxu1 %vm65_vm4, %v2642_v19  ;;  %v2545_v47 = vld [vmem:[%s5440_s0 + $0x460] sm:$0xff] }
 0x16c   :  { %3335 = vmatprep.mubr.msk.f32.mxu0 %vm3532_vm3, %v3533_v5  ;;  %3486 = vmatprep.mubr.msk.f32.mxu1 %vm3532_vm3, %v3533_v5  ;;  %v2643_v4 = vld [vmem:[%s5440_s0 + $0x5e0] sm:$0xff] }
 0x16e   :  { %v4884_v33 = vpop.f32.mrb[74].mxu0  ;;  %v4886_v61 = vpop.f32.mrb[74].mxu1 }
 0x16f   :  { %5519 = vst [vmem:[#allocation27_spill] sm:$0xff] %v4884_v33  ;;  %5520 = vst [vmem:[#allocation28_spill] sm:$0xff] %v4886_v61  ;;  %v3023_v54 = vpop.f32.mrb[75].mxu0  ;;  %3336 = vmatmul.mubr.msk.f32.gmra.mrb[180].mxu0 %vm65_vm4, %v2544_v26  ;;  %v3174_v12 = vpop.f32.mrb[75].mxu1  ;;  %3487 = vmatmul.mubr.msk.f32.gmra.mrb[180].mxu1 %vm65_vm4, %v2643_v4  ;;  %v2546_v33 = vld [vmem:[%s5440_s0 + $0x468] sm:$0xff] }
 0x170   :  { %3338 = vmatprep.mubr.msk.f32.mxu0 %vm3532_vm3, %v3533_v5  ;;  %3489 = vmatprep.mubr.msk.f32.mxu1 %vm3532_vm3, %v3533_v5  ;;  %v2644_v54 = vld [vmem:[%s5440_s0 + $0x5e8] sm:$0xff] }
 0x172   :  { %v4902_v19 = vpop.f32.mrb[76].mxu0  ;;  %v4904_v26 = vpop.f32.mrb[76].mxu1 }
 0x173   :  { %5521 = vst [vmem:[#allocation29_spill] sm:$0xff] %v4902_v19  ;;  %5522 = vst [vmem:[#allocation30_spill] sm:$0xff] %v4904_v26  ;;  %v3026_v12 = vpop.f32.mrb[77].mxu0  ;;  %3339 = vmatmul.mubr.msk.f32.gmra.mrb[182].mxu0 %vm65_vm4, %v2545_v47  ;;  %v3177_v61 = vpop.f32.mrb[77].mxu1  ;;  %3490 = vmatmul.mubr.msk.f32.gmra.mrb[182].mxu1 %vm65_vm4, %v2644_v54  ;;  %v2547_v19 = vld [vmem:[%s5440_s0 + $0x470] sm:$0xff] }
 0x174   :  { %3341 = vmatprep.mubr.msk.f32.mxu0 %vm3532_vm3, %v3533_v5  ;;  %3492 = vmatprep.mubr.msk.f32.mxu1 %vm3532_vm3, %v3533_v5  ;;  %v2645_v12 = vld [vmem:[%s5440_s0 + $0x5f0] sm:$0xff] }
 0x176   :  { %v4920_v4 = vpop.f32.mrb[78].mxu0  ;;  %v4922_v47 = vpop.f32.mrb[78].mxu1 }
 0x177   :  { %5523 = vst [vmem:[#allocation31_spill] sm:$0xff] %v4920_v4  ;;  %5524 = vst [vmem:[#allocation32_spill] sm:$0xff] %v4922_v47  ;;  %v3029_v61 = vpop.f32.mrb[79].mxu0  ;;  %3342 = vmatmul.mubr.msk.f32.gmra.mrb[184].mxu0 %vm65_vm4, %v2546_v33  ;;  %v3180_v26 = vpop.f32.mrb[79].mxu1  ;;  %3493 = vmatmul.mubr.msk.f32.gmra.mrb[184].mxu1 %vm65_vm4, %v2645_v12  ;;  %v2548_v4 = vld [vmem:[%s5440_s0 + $0x478] sm:$0xff] }
 0x178   :  { %3344 = vmatprep.mubr.msk.f32.mxu0 %vm3532_vm3, %v3533_v5  ;;  %3495 = vmatprep.mubr.msk.f32.mxu1 %vm3532_vm3, %v3533_v5  ;;  %v2646_v61 = vld [vmem:[%s5440_s0 + $0x5f8] sm:$0xff] }
 0x17a   :  { %v4938_v54 = vpop.f32.mrb[80].mxu0  ;;  %v4940_v33 = vpop.f32.mrb[80].mxu1 }
 0x17b   :  { %5525 = vst [vmem:[#allocation33_spill] sm:$0xff] %v4938_v54  ;;  %5526 = vst [vmem:[#allocation34_spill] sm:$0xff] %v4940_v33  ;;  %v3032_v26 = vpop.f32.mrb[81].mxu0  ;;  %3345 = vmatmul.mubr.msk.f32.gmra.mrb[186].mxu0 %vm65_vm4, %v2547_v19  ;;  %v3183_v47 = vpop.f32.mrb[81].mxu1  ;;  %3496 = vmatmul.mubr.msk.f32.gmra.mrb[186].mxu1 %vm65_vm4, %v2646_v61  ;;  %v2549_v54 = vld [vmem:[%s5440_s0 + $0x480] sm:$0xff] }
 0x17c   :  { %3347 = vmatprep.mubr.msk.f32.mxu0 %vm3532_vm3, %v3533_v5  ;;  %3498 = vmatprep.mubr.msk.f32.mxu1 %vm3532_vm3, %v3533_v5  ;;  %v2647_v26 = vld [vmem:[%s5440_s0 + $0x600] sm:$0xff] }
 0x17e   :  { %v4956_v12 = vpop.f32.mrb[82].mxu0  ;;  %v4958_v19 = vpop.f32.mrb[82].mxu1 }
 0x17f   :  { %5527 = vst [vmem:[#allocation35_spill] sm:$0xff] %v4956_v12  ;;  %5528 = vst [vmem:[#allocation36_spill] sm:$0xff] %v4958_v19  ;;  %v3035_v47 = vpop.f32.mrb[83].mxu0  ;;  %3348 = vmatmul.mubr.msk.f32.gmra.mrb[188].mxu0 %vm65_vm4, %v2548_v4  ;;  %v3186_v33 = vpop.f32.mrb[83].mxu1  ;;  %3499 = vmatmul.mubr.msk.f32.gmra.mrb[188].mxu1 %vm65_vm4, %v2647_v26  ;;  %v2550_v12 = vld [vmem:[%s5440_s0 + $0x488] sm:$0xff] }
 0x180   :  { %3350 = vmatprep.mubr.msk.f32.mxu0 %vm3532_vm3, %v3533_v5  ;;  %3501 = vmatprep.mubr.msk.f32.mxu1 %vm3532_vm3, %v3533_v5  ;;  %v2648_v47 = vld [vmem:[%s5440_s0 + $0x608] sm:$0xff] }
 0x182   :  { %v4974_v61 = vpop.f32.mrb[84].mxu0  ;;  %v4976_v4 = vpop.f32.mrb[84].mxu1 }
 0x183   :  { %5529 = vst [vmem:[#allocation37_spill] sm:$0xff] %v4974_v61  ;;  %5530 = vst [vmem:[#allocation38_spill] sm:$0xff] %v4976_v4  ;;  %v3038_v33 = vpop.f32.mrb[85].mxu0  ;;  %3351 = vmatmul.mubr.msk.f32.gmra.mrb[190].mxu0 %vm65_vm4, %v2549_v54  ;;  %v3189_v19 = vpop.f32.mrb[85].mxu1  ;;  %3502 = vmatmul.mubr.msk.f32.gmra.mrb[190].mxu1 %vm65_vm4, %v2648_v47  ;;  %v2551_v61 = vld [vmem:[%s5440_s0 + $0x490] sm:$0xff] }
 0x184   :  { %3353 = vmatprep.mubr.msk.f32.mxu0 %vm3532_vm3, %v3533_v5  ;;  %3504 = vmatprep.mubr.msk.f32.mxu1 %vm3532_vm3, %v3533_v5  ;;  %v2649_v33 = vld [vmem:[%s5440_s0 + $0x610] sm:$0xff] }
 0x186   :  { %v4992_v26 = vpop.f32.mrb[86].mxu0  ;;  %v4994_v54 = vpop.f32.mrb[86].mxu1 }
 0x187   :  { %5531 = vst [vmem:[#allocation39_spill] sm:$0xff] %v4992_v26  ;;  %5532 = vst [vmem:[#allocation40_spill] sm:$0xff] %v4994_v54  ;;  %v3041_v19 = vpop.f32.mrb[87].mxu0  ;;  %3354 = vmatmul.mubr.msk.f32.gmra.mrb[192].mxu0 %vm65_vm4, %v2550_v12  ;;  %v3192_v4 = vpop.f32.mrb[87].mxu1  ;;  %3505 = vmatmul.mubr.msk.f32.gmra.mrb[192].mxu1 %vm65_vm4, %v2649_v33 }
 0x188   :  { %3356 = vmatprep.mubr.msk.f32.mxu0 %vm3532_vm3, %v3533_v5  ;;  %3507 = vmatprep.mubr.msk.f32.mxu1 %vm3532_vm3, %v3533_v5  ;;  %v2650_v19 = vld [vmem:[%s5440_s0 + $0x618] sm:$0xff] }
 0x18a   :  { %v5010_v47 = vpop.f32.mrb[88].mxu0  ;;  %v5012_v12 = vpop.f32.mrb[88].mxu1 }
 0x18b   :  { %5533 = vst [vmem:[#allocation41_spill] sm:$0xff] %v5010_v47  ;;  %5534 = vst [vmem:[#allocation42_spill] sm:$0xff] %v5012_v12  ;;  %v3044_v4 = vpop.f32.mrb[89].mxu0  ;;  %3357 = vmatmul.mubr.msk.f32.gmra.mrb[194].mxu0 %vm65_vm4, %v2551_v61  ;;  %v3195_v54 = vpop.f32.mrb[89].mxu1  ;;  %3508 = vmatmul.mubr.msk.f32.gmra.mrb[194].mxu1 %vm65_vm4, %v2650_v19 }
 0x18e   :  { %v5018_v26 = vpop.f32.mrb[90].mxu0  ;;  %v5020_v5 = vpop.f32.mrb[90].mxu1 }
 0x18f   :  { %5535 = vst [vmem:[#allocation43_spill] sm:$0xff] %v5018_v26  ;;  %5536 = vst [vmem:[#allocation44_spill] sm:$0xff] %v5020_v5  ;;  %v3047_v7 = vpop.f32.mrb[91].mxu0  ;;  %v3198_v32 = vpop.f32.mrb[91].mxu1 }
 0x192   :  { %v5024_v57 = vpop.f32.mrb[92].mxu0  ;;  %v5026_v4 = vpop.f32.mrb[92].mxu1 }
 0x193   :  { %5537 = vst [vmem:[#allocation45_spill] sm:$0xff] %v5024_v57  ;;  %5538 = vst [vmem:[#allocation46_spill] sm:$0xff] %v5026_v4  ;;  %v3050_v62 = vpop.f32.mrb[93].mxu0  ;;  %v3201_v54 = vpop.f32.mrb[93].mxu1  ;;  %v5543_v4 = vmax.f32 %v4218_v51, %v4220_v52 }
 0x196   :  { %v5030_v33 = vpop.f32.mrb[94].mxu0  ;;  %v5032_v19 = vpop.f32.mrb[94].mxu1 }
 0x197   :  { %5539 = vst [vmem:[#allocation47_spill] sm:$0xff] %v5030_v33  ;;  %5540 = vst [vmem:[#allocation48_spill] sm:$0xff] %v5032_v19  ;;  %v3053_v12 = vpop.f32.mrb[95].mxu0  ;;  %v3204_v47 = vpop.f32.mrb[95].mxu1 }
 0x198   :  { %v5048_v47 = vld [vmem:[%s5441_s2] ss:$0 sm:$0xff] }
 0x19a   :  { %v5036_v40 = vpop.f32.mrb[96].mxu0  ;;  %v5038_v32 = vpop.f32.mrb[96].mxu1 }
 0x19b   :  { %5541 = vst [vmem:[#allocation49_spill] sm:$0xff] %v5036_v40  ;;  %5542 = vst [vmem:[#allocation50_spill] sm:$0xff] %v5038_v32  ;;  %v3056_v5 = vpop.f32.mrb[97].mxu0  ;;  %v3207_v26 = vpop.f32.mrb[97].mxu1 }
 0x19c   :  { %v5544_v26 = vmax.f32 %v4236_v58, %v4238_v59 }
 0x19e   :  { %v1346_v61 = vpop.f32.mrb[98].mxu0  ;;  %v1902_v54 = vpop.f32.mrb[98].mxu1 }
 0x19f   :  { %v1590_v57 = vmax.f32 %v5543_v4, %v1346_v61  ;;  %v3214_v12 = vpop.f32.mrb[99].mxu0  ;;  %v3365_v20 = vpop.f32.mrb[99].mxu1  ;;  %v5545_v61 = vmax.f32 %v4254_v1, %v4256_v2 }
 0x1a1   :  { %v2146_v7 = vmax.f32 %v1590_v57, %v1902_v54  ;;  %v5546_v54 = vmax.f32 %v4272_v9, %v4274_v10 }
 0x1a2   :  { %v1351_v19 = vpop.f32.mrb[100].mxu0  ;;  %v1907_v5 = vpop.f32.mrb[100].mxu1 }
 0x1a3   :  { %v2202_v33 = vadd.f32 %v5048_v47, %v2146_v7  ;;  %v1591_v62 = vmax.f32 %v5544_v26, %v1351_v19  ;;  %v3217_v32 = vpop.f32.mrb[101].mxu0  ;;  %v3368_v40 = vpop.f32.mrb[101].mxu1 }
 0x1a5   :  { %v2251_v51 = vmax.f32 %v2202_v33, 0.0  ;;  %v2147_v52 = vmax.f32 %v1591_v62, %v1907_v5 }
 0x1a6   :  { %v1356_v20 = vpop.f32.mrb[102].mxu0  ;;  %v1912_v4 = vpop.f32.mrb[102].mxu1 }
 0x1a7   :  { %2301 = vst.msk [vmem:[%s5442_s3] sm:$0xff] %vm2300_vm5, %v2251_v51  ;;  %v2203_v57 = vadd.f32 %v5048_v47, %v2147_v52  ;;  %v1592_v7 = vmax.f32 %v5545_v61, %v1356_v20  ;;  %v3220_v58 = vpop.f32.mrb[103].mxu0  ;;  %v3371_v59 = vpop.f32.mrb[103].mxu1 }
 0x1a9   :  { %v2252_v19 = vmax.f32 %v2203_v57, 0.0  ;;  %v2148_v40 = vmax.f32 %v1592_v7, %v1912_v4  ;;  %v5547_v4 = vmax.f32 %v4290_v16, %v4292_v17 }
 0x1aa   :  { %v1361_v32 = vpop.f32.mrb[104].mxu0  ;;  %v1917_v33 = vpop.f32.mrb[104].mxu1 }
 0x1ab   :  { %2302 = vst.msk [vmem:[%s5442_s3 + $0x8] sm:$0xff] %vm2300_vm5, %v2252_v19  ;;  %v2204_v62 = vadd.f32 %v5048_v47, %v2148_v40  ;;  %v1593_v12 = vmax.f32 %v5546_v54, %v1361_v32  ;;  %v3223_v5 = vpop.f32.mrb[105].mxu0  ;;  %v3374_v1 = vpop.f32.mrb[105].mxu1  ;;  %v5548_v40 = vmax.f32 %v4308_v23, %v4310_v24 }
 0x1ac   :  { %v5549_v1 = vmax.f32 %v4326_v30, %v4328_v31 }
 0x1ad   :  { %v2253_v2 = vmax.f32 %v2204_v62, 0.0  ;;  %v2149_v26 = vmax.f32 %v1593_v12, %v1917_v33 }
 0x1ae   :  { %v1366_v51 = vpop.f32.mrb[106].mxu0  ;;  %v1922_v52 = vpop.f32.mrb[106].mxu1 }
 0x1af   :  { %2303 = vst.msk [vmem:[%s5442_s3 + $0x10] sm:$0xff] %vm2300_vm5, %v2253_v2  ;;  %v2205_v20 = vadd.f32 %v5048_v47, %v2149_v26  ;;  %v1594_v57 = vmax.f32 %v5547_v4, %v1366_v51  ;;  %v3226_v61 = vpop.f32.mrb[107].mxu0  ;;  %v3377_v9 = vpop.f32.mrb[107].mxu1 }
 0x1b1   :  { %v2254_v10 = vmax.f32 %v2205_v20, 0.0  ;;  %v2150_v7 = vmax.f32 %v1594_v57, %v1922_v52  ;;  %v5550_v57 = vmax.f32 %v4344_v37, %v4346_v38 }
 0x1b2   :  { %v1371_v58 = vpop.f32.mrb[108].mxu0  ;;  %v1927_v59 = vpop.f32.mrb[108].mxu1 }
 0x1b3   :  { %2304 = vst.msk [vmem:[%s5442_s3 + $0x18] sm:$0xff] %vm2300_vm5, %v2254_v10  ;;  %v2206_v19 = vadd.f32 %v5048_v47, %v2150_v7  ;;  %v1595_v32 = vmax.f32 %v5548_v40, %v1371_v58  ;;  %v3229_v33 = vpop.f32.mrb[109].mxu0  ;;  %v3380_v16 = vpop.f32.mrb[109].mxu1 }
 0x1b5   :  { %v2255_v17 = vmax.f32 %v2206_v19, 0.0  ;;  %v2151_v62 = vmax.f32 %v1595_v32, %v1927_v59  ;;  %v5551_v19 = vmax.f32 %v4362_v44, %v4364_v45 }
 0x1b6   :  { %v1376_v54 = vpop.f32.mrb[110].mxu0  ;;  %v1932_v12 = vpop.f32.mrb[110].mxu1 }
 0x1b7   :  { %2305 = vst.msk [vmem:[%s5442_s3 + $0x20] sm:$0xff] %vm2300_vm5, %v2255_v17  ;;  %v2207_v5 = vadd.f32 %v5048_v47, %v2151_v62  ;;  %v1596_v2 = vmax.f32 %v5549_v1, %v1376_v54  ;;  %v3232_v26 = vpop.f32.mrb[111].mxu0  ;;  %v3383_v23 = vpop.f32.mrb[111].mxu1  ;;  %v5552_v54 = vmax.f32 %v4380_v53, %v4382_v55 }
 0x1b9   :  { %v2256_v24 = vmax.f32 %v2207_v5, 0.0  ;;  %v2152_v51 = vmax.f32 %v1596_v2, %v1932_v12 }
 0x1ba   :  { %v1381_v52 = vpop.f32.mrb[112].mxu0  ;;  %v1937_v20 = vpop.f32.mrb[112].mxu1 }
 0x1bb   :  { %2306 = vst.msk [vmem:[%s5442_s3 + $0x28] sm:$0xff] %vm2300_vm5, %v2256_v24  ;;  %v2208_v4 = vadd.f32 %v5048_v47, %v2152_v51  ;;  %v1597_v61 = vmax.f32 %v5550_v57, %v1381_v52  ;;  %v3235_v9 = vpop.f32.mrb[113].mxu0  ;;  %v3386_v30 = vpop.f32.mrb[113].mxu1  ;;  %v5553_v24 = vmax.f32 %v4398_v0, %v4400_v3 }
 0x1bc   :  { %v5554_v9 = vmax.f32 %v4416_v14, %v4418_v15 }
 0x1bd   :  { %v2257_v31 = vmax.f32 %v2208_v4, 0.0  ;;  %v2153_v10 = vmax.f32 %v1597_v61, %v1937_v20 }
 0x1be   :  { %v1386_v7 = vpop.f32.mrb[114].mxu0  ;;  %v1942_v58 = vpop.f32.mrb[114].mxu1 }
 0x1bf   :  { %2307 = vst.msk [vmem:[%s5442_s3 + $0x30] sm:$0xff] %vm2300_vm5, %v2257_v31  ;;  %v2209_v59 = vadd.f32 %v5048_v47, %v2153_v10  ;;  %v1598_v40 = vmax.f32 %v5551_v19, %v1386_v7  ;;  %v3238_v32 = vpop.f32.mrb[115].mxu0  ;;  %v3389_v37 = vpop.f32.mrb[115].mxu1  ;;  %v5555_v19 = vmax.f32 %v4434_v27, %v4436_v28 }
 0x1c1   :  { %v2258_v38 = vmax.f32 %v2209_v59, 0.0  ;;  %v2154_v33 = vmax.f32 %v1598_v40, %v1942_v58 }
 0x1c2   :  { %v1391_v16 = vpop.f32.mrb[116].mxu0  ;;  %v1947_v17 = vpop.f32.mrb[116].mxu1 }
 0x1c3   :  { %2308 = vst.msk [vmem:[%s5442_s3 + $0x38] sm:$0xff] %vm2300_vm5, %v2258_v38  ;;  %v2210_v62 = vadd.f32 %v5048_v47, %v2154_v33  ;;  %v1599_v12 = vmax.f32 %v5552_v54, %v1391_v16  ;;  %v3241_v5 = vpop.f32.mrb[117].mxu0  ;;  %v3392_v44 = vpop.f32.mrb[117].mxu1 }
 0x1c5   :  { %v2259_v45 = vmax.f32 %v2210_v62, 0.0  ;;  %v2155_v1 = vmax.f32 %v1599_v12, %v1947_v17  ;;  %v5556_v17 = vmax.f32 %v4452_v39, %v4454_v41 }
 0x1c6   :  { %v1396_v2 = vpop.f32.mrb[118].mxu0  ;;  %v1952_v26 = vpop.f32.mrb[118].mxu1 }
 0x1c7   :  { %2309 = vst.msk [vmem:[%s5442_s3 + $0x40] sm:$0xff] %vm2300_vm5, %v2259_v45  ;;  %v2211_v23 = vadd.f32 %v5048_v47, %v2155_v1  ;;  %v1600_v51 = vmax.f32 %v5553_v24, %v1396_v2  ;;  %v3244_v52 = vpop.f32.mrb[119].mxu0  ;;  %v3395_v53 = vpop.f32.mrb[119].mxu1  ;;  %v5557_v1 = vmax.f32 %v4470_v50, %v4472_v56 }
 0x1c8   :  { %v5558_v53 = vmax.f32 %v4488_v11, %v4490_v13 }
 0x1c9   :  { %v2260_v55 = vmax.f32 %v2211_v23, 0.0  ;;  %v2156_v20 = vmax.f32 %v1600_v51, %v1952_v26 }
 0x1ca   :  { %v1401_v4 = vpop.f32.mrb[120].mxu0  ;;  %v1957_v57 = vpop.f32.mrb[120].mxu1 }
 0x1cb   :  { %2310 = vst.msk [vmem:[%s5442_s3 + $0x48] sm:$0xff] %vm2300_vm5, %v2260_v55  ;;  %v2212_v61 = vadd.f32 %v5048_v47, %v2156_v20  ;;  %v1601_v30 = vmax.f32 %v5554_v9, %v1401_v4  ;;  %v3247_v31 = vpop.f32.mrb[121].mxu0  ;;  %v3398_v0 = vpop.f32.mrb[121].mxu1 }
 0x1cd   :  { %v2261_v3 = vmax.f32 %v2212_v61, 0.0  ;;  %v2157_v10 = vmax.f32 %v1601_v30, %v1957_v57  ;;  %v5559_v30 = vmax.f32 %v4506_v34, %v4508_v35 }
 0x1ce   :  { %v1406_v7 = vpop.f32.mrb[122].mxu0  ;;  %v1962_v58 = vpop.f32.mrb[122].mxu1 }
 0x1cf   :  { %2311 = vst.msk [vmem:[%s5442_s3 + $0x50] sm:$0xff] %vm2300_vm5, %v2261_v3  ;;  %v2213_v59 = vadd.f32 %v5048_v47, %v2157_v10  ;;  %v1602_v40 = vmax.f32 %v5555_v19, %v1406_v7  ;;  %v3250_v32 = vpop.f32.mrb[123].mxu0  ;;  %v3401_v14 = vpop.f32.mrb[123].mxu1 }
 0x1d1   :  { %v2262_v15 = vmax.f32 %v2213_v59, 0.0  ;;  %v2158_v37 = vmax.f32 %v1602_v40, %v1962_v58  ;;  %v5560_v59 = vmax.f32 %v4524_v60, %v4526_v63 }
 0x1d2   :  { %v1411_v38 = vpop.f32.mrb[124].mxu0  ;;  %v1967_v33 = vpop.f32.mrb[124].mxu1 }
 0x1d3   :  { %2312 = vst.msk [vmem:[%s5442_s3 + $0x58] sm:$0xff] %vm2300_vm5, %v2262_v15  ;;  %v2214_v16 = vadd.f32 %v5048_v47, %v2158_v37  ;;  %v1603_v62 = vmax.f32 %v5556_v17, %v1411_v38  ;;  %v3253_v54 = vpop.f32.mrb[125].mxu0  ;;  %v3404_v27 = vpop.f32.mrb[125].mxu1  ;;  %v5561_v38 = vmax.f32 %v4542_v29, %v4544_v36 }
 0x1d5   :  { %v2263_v28 = vmax.f32 %v2214_v16, 0.0  ;;  %v2159_v12 = vmax.f32 %v1603_v62, %v1967_v33 }
 0x1d6   :  { %v1416_v5 = vpop.f32.mrb[126].mxu0  ;;  %v1972_v44 = vpop.f32.mrb[126].mxu1 }
 0x1d7   :  { %2313 = vst.msk [vmem:[%s5442_s3 + $0x60] sm:$0xff] %vm2300_vm5, %v2263_v28  ;;  %v2215_v45 = vadd.f32 %v5048_v47, %v2159_v12  ;;  %v1604_v2 = vmax.f32 %v5557_v1, %v1416_v5  ;;  %v3256_v26 = vpop.f32.mrb[127].mxu0  ;;  %v3407_v39 = vpop.f32.mrb[127].mxu1  ;;  %v5562_v28 = vmax.f32 %v4560_v46, %v4562_v22 }
 0x1d8   :  { %v5563_v26 = vmax.f32 %v4578_v25, %v4580_v6 }
 0x1d9   :  { %v2264_v41 = vmax.f32 %v2215_v45, 0.0  ;;  %v2160_v23 = vmax.f32 %v1604_v2, %v1972_v44 }
 0x1da   :  { %v1421_v24 = vpop.f32.mrb[128].mxu0  ;;  %v1977_v51 = vpop.f32.mrb[128].mxu1 }
 0x1db   :  { %2314 = vst.msk [vmem:[%s5442_s3 + $0x68] sm:$0xff] %vm2300_vm5, %v2264_v41  ;;  %v2216_v52 = vadd.f32 %v5048_v47, %v2160_v23  ;;  %v1605_v55 = vmax.f32 %v5558_v53, %v1421_v24  ;;  %v3259_v20 = vpop.f32.mrb[129].mxu0  ;;  %v3410_v50 = vpop.f32.mrb[129].mxu1  ;;  %v5564_v53 = vmax.f32 %v4596_v18, %v4598_v8 }
 0x1dd   :  { %v2265_v56 = vmax.f32 %v2216_v52, 0.0  ;;  %v2161_v4 = vmax.f32 %v1605_v55, %v1977_v51 }
 0x1de   :  { %v1426_v57 = vpop.f32.mrb[130].mxu0  ;;  %v1982_v61 = vpop.f32.mrb[130].mxu1 }
 0x1df   :  { %2315 = vst.msk [vmem:[%s5442_s3 + $0x70] sm:$0xff] %vm2300_vm5, %v2265_v56  ;;  %v2217_v9 = vadd.f32 %v5048_v47, %v2161_v4  ;;  %v1606_v31 = vmax.f32 %v5559_v30, %v1426_v57  ;;  %v3262_v0 = vpop.f32.mrb[131].mxu0  ;;  %v3413_v11 = vpop.f32.mrb[131].mxu1 }
 0x1e1   :  { %v2266_v13 = vmax.f32 %v2217_v9, 0.0  ;;  %v2162_v3 = vmax.f32 %v1606_v31, %v1982_v61  ;;  %v5565_v61 = vmax.f32 %v4614_v49, %v4616_v21 }
 0x1e2   :  { %v1431_v10 = vpop.f32.mrb[132].mxu0  ;;  %v1987_v7 = vpop.f32.mrb[132].mxu1 }
 0x1e3   :  { %2316 = vst.msk [vmem:[%s5442_s3 + $0x78] sm:$0xff] %vm2300_vm5, %v2266_v13  ;;  %v2218_v58 = vadd.f32 %v5048_v47, %v2162_v3  ;;  %v1607_v19 = vmax.f32 %v5560_v59, %v1431_v10  ;;  %v3265_v40 = vpop.f32.mrb[133].mxu0  ;;  %v3416_v34 = vpop.f32.mrb[133].mxu1  ;;  %v5566_v3 = vmax.f32 %v4632_v48, %v4634_v43 }
 0x1e4   :  { %v5567_v34 = vld [vmem:[#allocation2_spill] sm:$0xff] }
 0x1e5   :  { %v2267_v35 = vmax.f32 %v2218_v58, 0.0  ;;  %v2163_v32 = vmax.f32 %v1607_v19, %v1987_v7 }
 0x1e6   :  { %v1436_v14 = vpop.f32.mrb[134].mxu0  ;;  %v1992_v15 = vpop.f32.mrb[134].mxu1 }
 0x1e7   :  { %2317 = vst.msk [vmem:[%s5442_s3 + $0x80] sm:$0xff] %vm2300_vm5, %v2267_v35  ;;  %v2219_v37 = vadd.f32 %v5048_v47, %v2163_v32  ;;  %v1608_v33 = vmax.f32 %v5561_v38, %v1436_v14  ;;  %v3268_v16 = vpop.f32.mrb[135].mxu0  ;;  %v3419_v60 = vpop.f32.mrb[135].mxu1  ;;  %v5568_v35 = vmax.f32 %v4650_v42, %v5567_v34 }
 0x1e8   :  { %v5569_v16 = vld [vmem:[#allocation3_spill] sm:$0xff]  ;;  %v5570_v60 = vld [vmem:[#allocation4_spill] sm:$0xff] }
 0x1e9   :  { %v2268_v63 = vmax.f32 %v2219_v37, 0.0  ;;  %v2164_v17 = vmax.f32 %v1608_v33, %v1992_v15 }
 0x1ea   :  { %v1441_v62 = vpop.f32.mrb[136].mxu0  ;;  %v1997_v54 = vpop.f32.mrb[136].mxu1 }
 0x1eb   :  { %2318 = vst.msk [vmem:[%s5442_s3 + $0x88] sm:$0xff] %vm2300_vm5, %v2268_v63  ;;  %v2220_v27 = vadd.f32 %v5048_v47, %v2164_v17  ;;  %v1609_v12 = vmax.f32 %v5562_v28, %v1441_v62  ;;  %v3271_v5 = vpop.f32.mrb[137].mxu0  ;;  %v3422_v29 = vpop.f32.mrb[137].mxu1  ;;  %v5571_v63 = vmax.f32 %v5569_v16, %v5570_v60 }
 0x1ec   :  { %v5572_v29 = vld [vmem:[#allocation5_spill] sm:$0xff] }
 0x1ed   :  { %v2269_v36 = vmax.f32 %v2220_v27, 0.0  ;;  %v2165_v44 = vmax.f32 %v1609_v12, %v1997_v54 }
 0x1ee   :  { %v1446_v45 = vpop.f32.mrb[138].mxu0  ;;  %v2002_v1 = vpop.f32.mrb[138].mxu1 }
 0x1ef   :  { %2319 = vst.msk [vmem:[%s5442_s3 + $0x90] sm:$0xff] %vm2300_vm5, %v2269_v36  ;;  %v2221_v2 = vadd.f32 %v5048_v47, %v2165_v44  ;;  %v1610_v39 = vmax.f32 %v5563_v26, %v1446_v45  ;;  %v3274_v41 = vpop.f32.mrb[139].mxu0  ;;  %v3425_v46 = vpop.f32.mrb[139].mxu1  ;;  %v5573_v36 = vld [vmem:[#allocation6_spill] sm:$0xff] }
 0x1f0   :  { %v5574_v44 = vmax.f32 %v5572_v29, %v5573_v36 }
 0x1f1   :  { %v2270_v22 = vmax.f32 %v2221_v2, 0.0  ;;  %v2166_v23 = vmax.f32 %v1610_v39, %v2002_v1 }
 0x1f2   :  { %v1451_v24 = vpop.f32.mrb[140].mxu0  ;;  %v2007_v51 = vpop.f32.mrb[140].mxu1 }
 0x1f3   :  { %2320 = vst.msk [vmem:[%s5442_s3 + $0x98] sm:$0xff] %vm2300_vm5, %v2270_v22  ;;  %v2222_v52 = vadd.f32 %v5048_v47, %v2166_v23  ;;  %v1611_v55 = vmax.f32 %v5564_v53, %v1451_v24  ;;  %v3277_v20 = vpop.f32.mrb[141].mxu0  ;;  %v3428_v25 = vpop.f32.mrb[141].mxu1  ;;  %v5575_v23 = vld [vmem:[#allocation7_spill] sm:$0xff]  ;;  %v5576_v24 = vld [vmem:[#allocation8_spill] sm:$0xff] }
 0x1f5   :  { %v2271_v6 = vmax.f32 %v2222_v52, 0.0  ;;  %v2167_v50 = vmax.f32 %v1611_v55, %v2007_v51  ;;  %v5577_v51 = vmax.f32 %v5575_v23, %v5576_v24 }
 0x1f6   :  { %v1456_v56 = vpop.f32.mrb[142].mxu0  ;;  %v2012_v4 = vpop.f32.mrb[142].mxu1 }
 0x1f7   :  { %2321 = vst.msk [vmem:[%s5442_s3 + $0xa0] sm:$0xff] %vm2300_vm5, %v2271_v6  ;;  %v2223_v57 = vadd.f32 %v5048_v47, %v2167_v50  ;;  %v1612_v9 = vmax.f32 %v5565_v61, %v1456_v56  ;;  %v3280_v30 = vpop.f32.mrb[143].mxu0  ;;  %v3431_v18 = vpop.f32.mrb[143].mxu1 }
 0x1f9   :  { %v2272_v8 = vmax.f32 %v2223_v57, 0.0  ;;  %v2168_v31 = vmax.f32 %v1612_v9, %v2012_v4  ;;  %v5578_v4 = vld [vmem:[#allocation9_spill] sm:$0xff]  ;;  %v5579_v57 = vld [vmem:[#allocation10_spill] sm:$0xff] }
 0x1fa   :  { %v1461_v0 = vpop.f32.mrb[144].mxu0  ;;  %v2017_v11 = vpop.f32.mrb[144].mxu1  ;;  %v5580_v61 = vmax.f32 %v5578_v4, %v5579_v57 }
 0x1fb   :  { %2322 = vst.msk [vmem:[%s5442_s3 + $0xa8] sm:$0xff] %vm2300_vm5, %v2272_v8  ;;  %v2224_v13 = vadd.f32 %v5048_v47, %v2168_v31  ;;  %v1613_v10 = vmax.f32 %v5566_v3, %v1461_v0  ;;  %v3283_v7 = vpop.f32.mrb[145].mxu0  ;;  %v3434_v49 = vpop.f32.mrb[145].mxu1  ;;  %v5581_v3 = vld [vmem:[#allocation11_spill] sm:$0xff] }
 0x1fd   :  { %v2273_v21 = vmax.f32 %v2224_v13, 0.0  ;;  %v2169_v58 = vmax.f32 %v1613_v10, %v2017_v11  ;;  %v5582_v10 = vld [vmem:[#allocation12_spill] sm:$0xff] }
 0x1fe   :  { %v1466_v59 = vpop.f32.mrb[146].mxu0  ;;  %v2022_v19 = vpop.f32.mrb[146].mxu1  ;;  %v5583_v7 = vmax.f32 %v5581_v3, %v5582_v10 }
 0x1ff   :  { %2323 = vst.msk [vmem:[%s5442_s3 + $0xb0] sm:$0xff] %vm2300_vm5, %v2273_v21  ;;  %v2225_v40 = vadd.f32 %v5048_v47, %v2169_v58  ;;  %v1614_v32 = vmax.f32 %v5568_v35, %v1466_v59  ;;  %v3286_v14 = vpop.f32.mrb[147].mxu0  ;;  %v3437_v48 = vpop.f32.mrb[147].mxu1 }
 0x200   :  { %v5585_v14 = vld [vmem:[#allocation14_spill] sm:$0xff] }
 0x201   :  { %v2274_v43 = vmax.f32 %v2225_v40, 0.0  ;;  %v2170_v15 = vmax.f32 %v1614_v32, %v2022_v19  ;;  %v5584_v32 = vld [vmem:[#allocation13_spill] sm:$0xff] }
 0x202   :  { %v1471_v37 = vpop.f32.mrb[148].mxu0  ;;  %v2027_v38 = vpop.f32.mrb[148].mxu1  ;;  %v5586_v48 = vmax.f32 %v5584_v32, %v5585_v14 }
 0x203   :  { %2324 = vst.msk [vmem:[%s5442_s3 + $0xb8] sm:$0xff] %vm2300_vm5, %v2274_v43  ;;  %v2226_v33 = vadd.f32 %v5048_v47, %v2170_v15  ;;  %v1615_v17 = vmax.f32 %v5571_v63, %v1471_v37  ;;  %v3289_v62 = vpop.f32.mrb[149].mxu0  ;;  %v3440_v42 = vpop.f32.mrb[149].mxu1 }
 0x204   :  { %v5588_v62 = vld [vmem:[#allocation16_spill] sm:$0xff] }
 0x205   :  { %v2275_v54 = vmax.f32 %v2226_v33, 0.0  ;;  %v2171_v27 = vmax.f32 %v1615_v17, %v2027_v38  ;;  %v5587_v17 = vld [vmem:[#allocation15_spill] sm:$0xff] }
 0x206   :  { %v1476_v28 = vpop.f32.mrb[150].mxu0  ;;  %v2032_v12 = vpop.f32.mrb[150].mxu1  ;;  %v5589_v42 = vmax.f32 %v5587_v17, %v5588_v62 }
 0x207   :  { %2325 = vst.msk [vmem:[%s5442_s3 + $0xc0] sm:$0xff] %vm2300_vm5, %v2275_v54  ;;  %v2227_v5 = vadd.f32 %v5048_v47, %v2171_v27  ;;  %v1616_v45 = vmax.f32 %v5574_v44, %v1476_v28  ;;  %v3292_v1 = vpop.f32.mrb[151].mxu0  ;;  %v3443_v2 = vpop.f32.mrb[151].mxu1 }
 0x208   :  { %v5591_v1 = vld [vmem:[#allocation18_spill] sm:$0xff] }
 0x209   :  { %v2276_v26 = vmax.f32 %v2227_v5, 0.0  ;;  %v2172_v39 = vmax.f32 %v1616_v45, %v2032_v12  ;;  %v5590_v45 = vld [vmem:[#allocation17_spill] sm:$0xff] }
 0x20a   :  { %v1481_v41 = vpop.f32.mrb[152].mxu0  ;;  %v2037_v46 = vpop.f32.mrb[152].mxu1  ;;  %v5592_v2 = vmax.f32 %v5590_v45, %v5591_v1 }
 0x20b   :  { %2326 = vst.msk [vmem:[%s5442_s3 + $0xc8] sm:$0xff] %vm2300_vm5, %v2276_v26  ;;  %v2228_v22 = vadd.f32 %v5048_v47, %v2172_v39  ;;  %v1617_v52 = vmax.f32 %v5577_v51, %v1481_v41  ;;  %v3295_v53 = vpop.f32.mrb[153].mxu0  ;;  %v3446_v55 = vpop.f32.mrb[153].mxu1 }
 0x20c   :  { %v5594_v53 = vld [vmem:[#allocation20_spill] sm:$0xff] }
 0x20d   :  { %v2277_v20 = vmax.f32 %v2228_v22, 0.0  ;;  %v2173_v25 = vmax.f32 %v1617_v52, %v2037_v46  ;;  %v5593_v52 = vld [vmem:[#allocation19_spill] sm:$0xff] }
 0x20e   :  { %v1486_v6 = vpop.f32.mrb[154].mxu0  ;;  %v2042_v50 = vpop.f32.mrb[154].mxu1  ;;  %v5595_v55 = vmax.f32 %v5593_v52, %v5594_v53 }
 0x20f   :  { %2327 = vst.msk [vmem:[%s5442_s3 + $0xd0] sm:$0xff] %vm2300_vm5, %v2277_v20  ;;  %v2229_v56 = vadd.f32 %v5048_v47, %v2173_v25  ;;  %v1618_v9 = vmax.f32 %v5580_v61, %v1486_v6  ;;  %v3298_v30 = vpop.f32.mrb[155].mxu0  ;;  %v3449_v18 = vpop.f32.mrb[155].mxu1 }
 0x210   :  { %v5597_v30 = vld [vmem:[#allocation22_spill] sm:$0xff] }
 0x211   :  { %v2278_v8 = vmax.f32 %v2229_v56, 0.0  ;;  %v2174_v31 = vmax.f32 %v1618_v9, %v2042_v50  ;;  %v5596_v9 = vld [vmem:[#allocation21_spill] sm:$0xff] }
 0x212   :  { %v1491_v0 = vpop.f32.mrb[156].mxu0  ;;  %v2047_v11 = vpop.f32.mrb[156].mxu1  ;;  %v5598_v18 = vmax.f32 %v5596_v9, %v5597_v30 }
 0x213   :  { %2328 = vst.msk [vmem:[%s5442_s3 + $0xd8] sm:$0xff] %vm2300_vm5, %v2278_v8  ;;  %v2230_v13 = vadd.f32 %v5048_v47, %v2174_v31  ;;  %v1619_v49 = vmax.f32 %v5583_v7, %v1491_v0  ;;  %v3301_v21 = vpop.f32.mrb[157].mxu0  ;;  %v3452_v58 = vpop.f32.mrb[157].mxu1 }
 0x214   :  { %v5600_v21 = vld [vmem:[#allocation24_spill] sm:$0xff] }
 0x215   :  { %v2279_v59 = vmax.f32 %v2230_v13, 0.0  ;;  %v2175_v19 = vmax.f32 %v1619_v49, %v2047_v11  ;;  %v5599_v49 = vld [vmem:[#allocation23_spill] sm:$0xff] }
 0x216   :  { %v1496_v40 = vpop.f32.mrb[158].mxu0  ;;  %v2052_v34 = vpop.f32.mrb[158].mxu1  ;;  %v5601_v58 = vmax.f32 %v5599_v49, %v5600_v21 }
 0x217   :  { %2329 = vst.msk [vmem:[%s5442_s3 + $0xe0] sm:$0xff] %vm2300_vm5, %v2279_v59  ;;  %v2231_v35 = vadd.f32 %v5048_v47, %v2175_v19  ;;  %v1620_v43 = vmax.f32 %v5586_v48, %v1496_v40  ;;  %v3304_v15 = vpop.f32.mrb[159].mxu0  ;;  %v3455_v37 = vpop.f32.mrb[159].mxu1 }
 0x218   :  { %v5603_v15 = vld [vmem:[#allocation26_spill] sm:$0xff] }
 0x219   :  { %v2280_v38 = vmax.f32 %v2231_v35, 0.0  ;;  %v2176_v33 = vmax.f32 %v1620_v43, %v2052_v34  ;;  %v5602_v43 = vld [vmem:[#allocation25_spill] sm:$0xff] }
 0x21a   :  { %v1501_v16 = vpop.f32.mrb[160].mxu0  ;;  %v2057_v60 = vpop.f32.mrb[160].mxu1  ;;  %v5604_v37 = vmax.f32 %v5602_v43, %v5603_v15 }
 0x21b   :  { %2330 = vst.msk [vmem:[%s5442_s3 + $0xe8] sm:$0xff] %vm2300_vm5, %v2280_v38  ;;  %v2232_v63 = vadd.f32 %v5048_v47, %v2176_v33  ;;  %v1621_v54 = vmax.f32 %v5589_v42, %v1501_v16  ;;  %v3307_v27 = vpop.f32.mrb[161].mxu0  ;;  %v3458_v28 = vpop.f32.mrb[161].mxu1 }
 0x21c   :  { %v5606_v27 = vld [vmem:[#allocation28_spill] sm:$0xff] }
 0x21d   :  { %v2281_v12 = vmax.f32 %v2232_v63, 0.0  ;;  %v2177_v5 = vmax.f32 %v1621_v54, %v2057_v60  ;;  %v5605_v54 = vld [vmem:[#allocation27_spill] sm:$0xff] }
 0x21e   :  { %v1506_v29 = vpop.f32.mrb[162].mxu0  ;;  %v2062_v36 = vpop.f32.mrb[162].mxu1  ;;  %v5607_v28 = vmax.f32 %v5605_v54, %v5606_v27 }
 0x21f   :  { %2331 = vst.msk [vmem:[%s5442_s3 + $0xf0] sm:$0xff] %vm2300_vm5, %v2281_v12  ;;  %v2233_v44 = vadd.f32 %v5048_v47, %v2177_v5  ;;  %v1622_v26 = vmax.f32 %v5592_v2, %v1506_v29  ;;  %v3310_v39 = vpop.f32.mrb[163].mxu0  ;;  %v3461_v41 = vpop.f32.mrb[163].mxu1 }
 0x220   :  { %v5609_v39 = vld [vmem:[#allocation30_spill] sm:$0xff] }
 0x221   :  { %v2282_v46 = vmax.f32 %v2233_v44, 0.0  ;;  %v2178_v22 = vmax.f32 %v1622_v26, %v2062_v36  ;;  %v5608_v26 = vld [vmem:[#allocation29_spill] sm:$0xff] }
 0x222   :  { %v1511_v23 = vpop.f32.mrb[164].mxu0  ;;  %v2067_v24 = vpop.f32.mrb[164].mxu1  ;;  %v5610_v41 = vmax.f32 %v5608_v26, %v5609_v39 }
 0x223   :  { %2332 = vst.msk [vmem:[%s5442_s3 + $0xf8] sm:$0xff] %vm2300_vm5, %v2282_v46  ;;  %v2234_v51 = vadd.f32 %v5048_v47, %v2178_v22  ;;  %v1623_v20 = vmax.f32 %v5595_v55, %v1511_v23  ;;  %v3313_v25 = vpop.f32.mrb[165].mxu0  ;;  %v3464_v6 = vpop.f32.mrb[165].mxu1 }
 0x224   :  { %v5612_v25 = vld [vmem:[#allocation32_spill] sm:$0xff] }
 0x225   :  { %v2283_v50 = vmax.f32 %v2234_v51, 0.0  ;;  %v2179_v56 = vmax.f32 %v1623_v20, %v2067_v24  ;;  %v5611_v20 = vld [vmem:[#allocation31_spill] sm:$0xff] }
 0x226   :  { %v1516_v4 = vpop.f32.mrb[166].mxu0  ;;  %v2072_v57 = vpop.f32.mrb[166].mxu1  ;;  %v5613_v6 = vmax.f32 %v5611_v20, %v5612_v25 }
 0x227   :  { %2333 = vst.msk [vmem:[%s5442_s3 + $0x100] sm:$0xff] %vm2300_vm5, %v2283_v50  ;;  %v2235_v61 = vadd.f32 %v5048_v47, %v2179_v56  ;;  %v1624_v8 = vmax.f32 %v5598_v18, %v1516_v4  ;;  %v3316_v31 = vpop.f32.mrb[167].mxu0  ;;  %v3467_v0 = vpop.f32.mrb[167].mxu1 }
 0x228   :  { %v5615_v31 = vld [vmem:[#allocation34_spill] sm:$0xff] }
 0x229   :  { %v2284_v11 = vmax.f32 %v2235_v61, 0.0  ;;  %v2180_v13 = vmax.f32 %v1624_v8, %v2072_v57  ;;  %v5614_v8 = vld [vmem:[#allocation33_spill] sm:$0xff] }
 0x22a   :  { %v1521_v3 = vpop.f32.mrb[168].mxu0  ;;  %v2077_v10 = vpop.f32.mrb[168].mxu1  ;;  %v5616_v0 = vmax.f32 %v5614_v8, %v5615_v31 }
 0x22b   :  { %2334 = vst.msk [vmem:[%s5442_s3 + $0x108] sm:$0xff] %vm2300_vm5, %v2284_v11  ;;  %v2236_v7 = vadd.f32 %v5048_v47, %v2180_v13  ;;  %v1625_v59 = vmax.f32 %v5601_v58, %v1521_v3  ;;  %v3319_v19 = vpop.f32.mrb[169].mxu0  ;;  %v3470_v40 = vpop.f32.mrb[169].mxu1 }
 0x22c   :  { %v5618_v19 = vld [vmem:[#allocation36_spill] sm:$0xff] }
 0x22d   :  { %v2285_v34 = vmax.f32 %v2236_v7, 0.0  ;;  %v2181_v35 = vmax.f32 %v1625_v59, %v2077_v10  ;;  %v5617_v59 = vld [vmem:[#allocation35_spill] sm:$0xff] }
 0x22e   :  { %v1526_v32 = vpop.f32.mrb[170].mxu0  ;;  %v2082_v14 = vpop.f32.mrb[170].mxu1  ;;  %v5619_v40 = vmax.f32 %v5617_v59, %v5618_v19 }
 0x22f   :  { %2335 = vst.msk [vmem:[%s5442_s3 + $0x110] sm:$0xff] %vm2300_vm5, %v2285_v34  ;;  %v2237_v48 = vadd.f32 %v5048_v47, %v2181_v35  ;;  %v1626_v38 = vmax.f32 %v5604_v37, %v1526_v32  ;;  %v3322_v33 = vpop.f32.mrb[171].mxu0  ;;  %v3473_v16 = vpop.f32.mrb[171].mxu1 }
 0x230   :  { %v5621_v33 = vld [vmem:[#allocation38_spill] sm:$0xff] }
 0x231   :  { %v2286_v60 = vmax.f32 %v2237_v48, 0.0  ;;  %v2182_v63 = vmax.f32 %v1626_v38, %v2082_v14  ;;  %v5620_v38 = vld [vmem:[#allocation37_spill] sm:$0xff] }
 0x232   :  { %v1531_v17 = vpop.f32.mrb[172].mxu0  ;;  %v2087_v62 = vpop.f32.mrb[172].mxu1  ;;  %v5622_v16 = vmax.f32 %v5620_v38, %v5621_v33 }
 0x233   :  { %2336 = vst.msk [vmem:[%s5442_s3 + $0x118] sm:$0xff] %vm2300_vm5, %v2286_v60  ;;  %v2238_v42 = vadd.f32 %v5048_v47, %v2182_v63  ;;  %v1627_v12 = vmax.f32 %v5607_v28, %v1531_v17  ;;  %v3325_v5 = vpop.f32.mrb[173].mxu0  ;;  %v3476_v29 = vpop.f32.mrb[173].mxu1 }
 0x234   :  { %v5624_v5 = vld [vmem:[#allocation40_spill] sm:$0xff] }
 0x235   :  { %v2287_v36 = vmax.f32 %v2238_v42, 0.0  ;;  %v2183_v44 = vmax.f32 %v1627_v12, %v2087_v62  ;;  %v5623_v12 = vld [vmem:[#allocation39_spill] sm:$0xff] }
 0x236   :  { %v1536_v45 = vpop.f32.mrb[174].mxu0  ;;  %v2092_v1 = vpop.f32.mrb[174].mxu1  ;;  %v5625_v29 = vmax.f32 %v5623_v12, %v5624_v5 }
 0x237   :  { %2337 = vst.msk [vmem:[%s5442_s3 + $0x120] sm:$0xff] %vm2300_vm5, %v2287_v36  ;;  %v2239_v2 = vadd.f32 %v5048_v47, %v2183_v44  ;;  %v1628_v46 = vmax.f32 %v5610_v41, %v1536_v45  ;;  %v3328_v22 = vpop.f32.mrb[175].mxu0  ;;  %v3479_v23 = vpop.f32.mrb[175].mxu1 }
 0x238   :  { %v5627_v22 = vld [vmem:[#allocation42_spill] sm:$0xff] }
 0x239   :  { %v2288_v24 = vmax.f32 %v2239_v2, 0.0  ;;  %v2184_v51 = vmax.f32 %v1628_v46, %v2092_v1  ;;  %v5626_v46 = vld [vmem:[#allocation41_spill] sm:$0xff] }
 0x23a   :  { %v1541_v52 = vpop.f32.mrb[176].mxu0  ;;  %v2097_v53 = vpop.f32.mrb[176].mxu1  ;;  %v5628_v23 = vmax.f32 %v5626_v46, %v5627_v22 }
 0x23b   :  { %2338 = vst.msk [vmem:[%s5442_s3 + $0x128] sm:$0xff] %vm2300_vm5, %v2288_v24  ;;  %v2240_v55 = vadd.f32 %v5048_v47, %v2184_v51  ;;  %v1629_v50 = vmax.f32 %v5613_v6, %v1541_v52  ;;  %v3331_v56 = vpop.f32.mrb[177].mxu0  ;;  %v3482_v4 = vpop.f32.mrb[177].mxu1 }
 0x23c   :  { %v5630_v56 = vld [vmem:[#allocation44_spill] sm:$0xff] }
 0x23d   :  { %v2289_v57 = vmax.f32 %v2240_v55, 0.0  ;;  %v2185_v61 = vmax.f32 %v1629_v50, %v2097_v53  ;;  %v5629_v50 = vld [vmem:[#allocation43_spill] sm:$0xff] }
 0x23e   :  { %v1546_v9 = vpop.f32.mrb[178].mxu0  ;;  %v2102_v30 = vpop.f32.mrb[178].mxu1  ;;  %v5631_v4 = vmax.f32 %v5629_v50, %v5630_v56 }
 0x23f   :  { %2339 = vst.msk [vmem:[%s5442_s3 + $0x130] sm:$0xff] %vm2300_vm5, %v2289_v57  ;;  %v2241_v18 = vadd.f32 %v5048_v47, %v2185_v61  ;;  %v1630_v11 = vmax.f32 %v5616_v0, %v1546_v9  ;;  %v3334_v13 = vpop.f32.mrb[179].mxu0  ;;  %v3485_v3 = vpop.f32.mrb[179].mxu1 }
 0x240   :  { %v5633_v13 = vld [vmem:[#allocation46_spill] sm:$0xff] }
 0x241   :  { %v2290_v10 = vmax.f32 %v2241_v18, 0.0  ;;  %v2186_v7 = vmax.f32 %v1630_v11, %v2102_v30  ;;  %v5632_v11 = vld [vmem:[#allocation45_spill] sm:$0xff] }
 0x242   :  { %v1551_v49 = vpop.f32.mrb[180].mxu0  ;;  %v2107_v21 = vpop.f32.mrb[180].mxu1  ;;  %v5634_v3 = vmax.f32 %v5632_v11, %v5633_v13 }
 0x243   :  { %2340 = vst.msk [vmem:[%s5442_s3 + $0x138] sm:$0xff] %vm2300_vm5, %v2290_v10  ;;  %v2242_v58 = vadd.f32 %v5048_v47, %v2186_v7  ;;  %v1631_v34 = vmax.f32 %v5619_v40, %v1551_v49  ;;  %v3337_v35 = vpop.f32.mrb[181].mxu0  ;;  %v3488_v32 = vpop.f32.mrb[181].mxu1 }
 0x244   :  { %v5636_v35 = vld [vmem:[#allocation48_spill] sm:$0xff] }
 0x245   :  { %v2291_v14 = vmax.f32 %v2242_v58, 0.0  ;;  %v2187_v48 = vmax.f32 %v1631_v34, %v2107_v21  ;;  %v5635_v34 = vld [vmem:[#allocation47_spill] sm:$0xff] }
 0x246   :  { %v1556_v43 = vpop.f32.mrb[182].mxu0  ;;  %v2112_v15 = vpop.f32.mrb[182].mxu1  ;;  %v5637_v32 = vmax.f32 %v5635_v34, %v5636_v35 }
 0x247   :  { %2341 = vst.msk [vmem:[%s5442_s3 + $0x140] sm:$0xff] %vm2300_vm5, %v2291_v14  ;;  %v2243_v37 = vadd.f32 %v5048_v47, %v2187_v48  ;;  %v1632_v60 = vmax.f32 %v5622_v16, %v1556_v43  ;;  %v3340_v63 = vpop.f32.mrb[183].mxu0  ;;  %v3491_v17 = vpop.f32.mrb[183].mxu1 }
 0x248   :  { %v5639_v63 = vld [vmem:[#allocation50_spill] sm:$0xff] }
 0x249   :  { %v2292_v62 = vmax.f32 %v2243_v37, 0.0  ;;  %v2188_v42 = vmax.f32 %v1632_v60, %v2112_v15  ;;  %v5638_v60 = vld [vmem:[#allocation49_spill] sm:$0xff] }
 0x24a   :  { %v1561_v54 = vpop.f32.mrb[184].mxu0  ;;  %v2117_v27 = vpop.f32.mrb[184].mxu1  ;;  %v5640_v17 = vmax.f32 %v5638_v60, %v5639_v63 }
 0x24b   :  { %2342 = vst.msk [vmem:[%s5442_s3 + $0x148] sm:$0xff] %vm2300_vm5, %v2292_v62  ;;  %v2244_v28 = vadd.f32 %v5048_v47, %v2188_v42  ;;  %v1633_v36 = vmax.f32 %v5625_v29, %v1561_v54  ;;  %v3343_v44 = vpop.f32.mrb[185].mxu0  ;;  %v3494_v45 = vpop.f32.mrb[185].mxu1 }
 0x24d   :  { %v2293_v1 = vmax.f32 %v2244_v28, 0.0  ;;  %v2189_v2 = vmax.f32 %v1633_v36, %v2117_v27 }
 0x24e   :  { %v1566_v26 = vpop.f32.mrb[186].mxu0  ;;  %v2122_v39 = vpop.f32.mrb[186].mxu1 }
 0x24f   :  { %2343 = vst.msk [vmem:[%s5442_s3 + $0x150] sm:$0xff] %vm2300_vm5, %v2293_v1  ;;  %v2245_v41 = vadd.f32 %v5048_v47, %v2189_v2  ;;  %v1634_v24 = vmax.f32 %v5628_v23, %v1566_v26  ;;  %v3346_v51 = vpop.f32.mrb[187].mxu0  ;;  %v3497_v52 = vpop.f32.mrb[187].mxu1 }
 0x251   :  { %v2294_v53 = vmax.f32 %v2245_v41, 0.0  ;;  %v2190_v55 = vmax.f32 %v1634_v24, %v2122_v39 }
 0x252   :  { %v1571_v20 = vpop.f32.mrb[188].mxu0  ;;  %v2127_v25 = vpop.f32.mrb[188].mxu1 }
 0x253   :  { %2344 = vst.msk [vmem:[%s5442_s3 + $0x158] sm:$0xff] %vm2300_vm5, %v2294_v53  ;;  %v2246_v6 = vadd.f32 %v5048_v47, %v2190_v55  ;;  %v1635_v57 = vmax.f32 %v5631_v4, %v1571_v20  ;;  %v3349_v61 = vpop.f32.mrb[189].mxu0  ;;  %v3500_v9 = vpop.f32.mrb[189].mxu1 }
 0x255   :  { %v2295_v30 = vmax.f32 %v2246_v6, 0.0  ;;  %v2191_v18 = vmax.f32 %v1635_v57, %v2127_v25 }
 0x256   :  { %v1576_v8 = vpop.f32.mrb[190].mxu0  ;;  %v2132_v31 = vpop.f32.mrb[190].mxu1 }
 0x257   :  { %2345 = vst.msk [vmem:[%s5442_s3 + $0x160] sm:$0xff] %vm2300_vm5, %v2295_v30  ;;  %v2247_v0 = vadd.f32 %v5048_v47, %v2191_v18  ;;  %v1636_v10 = vmax.f32 %v5634_v3, %v1576_v8  ;;  %v3352_v7 = vpop.f32.mrb[191].mxu0  ;;  %v3503_v49 = vpop.f32.mrb[191].mxu1 }
 0x259   :  { %v2296_v21 = vmax.f32 %v2247_v0, 0.0  ;;  %v2192_v58 = vmax.f32 %v1636_v10, %v2132_v31 }
 0x25a   :  { %v1581_v59 = vpop.f32.mrb[192].mxu0  ;;  %v2137_v19 = vpop.f32.mrb[192].mxu1 }
 0x25b   :  { %2346 = vst.msk [vmem:[%s5442_s3 + $0x168] sm:$0xff] %vm2300_vm5, %v2296_v21  ;;  %v2248_v40 = vadd.f32 %v5048_v47, %v2192_v58  ;;  %v1637_v14 = vmax.f32 %v5637_v32, %v1581_v59  ;;  %v3355_v48 = vpop.f32.mrb[193].mxu0  ;;  %v3506_v43 = vpop.f32.mrb[193].mxu1 }
 0x25d   :  { %v2297_v15 = vmax.f32 %v2248_v40, 0.0  ;;  %v2193_v37 = vmax.f32 %v1637_v14, %v2137_v19 }
 0x25e   :  { %v1586_v38 = vpop.f32.mrb[194].mxu0  ;;  %v2142_v33 = vpop.f32.mrb[194].mxu1 }
 0x25f   :  { %2347 = vst.msk [vmem:[%s5442_s3 + $0x170] sm:$0xff] %vm2300_vm5, %v2297_v15  ;;  %v2249_v16 = vadd.f32 %v5048_v47, %v2193_v37  ;;  %v1638_v62 = vmax.f32 %v5640_v17, %v1586_v38  ;;  %v3358_v42 = vpop.f32.mrb[195].mxu0  ;;  %v3509_v54 = vpop.f32.mrb[195].mxu1 }
 0x261   :  { %v2298_v27 = vmax.f32 %v2249_v16, 0.0  ;;  %v2194_v28 = vmax.f32 %v1638_v62, %v2142_v33 }
 0x263   :  { %2348 = vst.msk [vmem:[%s5442_s3 + $0x178] sm:$0xff] %vm2300_vm5, %v2298_v27  ;;  %v2250_v12 = vadd.f32 %v5048_v47, %v2194_v28 }
 0x265   :  { %v2299_v5 = vmax.f32 %v2250_v12, 0.0 }
 0x267   :  { %2349 = vst.msk [vmem:[%s5442_s3 + $0x180] sm:$0xff] %vm2300_vm5, %v2299_v5 }

</bundles_post_ra>
